<compile_context>
chip_gen: v5e
topology: v5e:2x2
jax: 0.10.0
libtpu: 0.0.40
codegen_flags: <defaults>
</compile_context>

<pallas_src>
import jax
import jax.numpy as jnp
from jax.experimental import pallas as pl
from jax.experimental.pallas import tpu as pltpu

EPS = 1e-5
LANES = 128


# ----------------------------- small helpers -----------------------------------


def _round_up(x, n):
    return ((x + n - 1) // n) * n


def _pick_tile_m(m):
    # Prefer large row tiles (512-1024) for HBM-roofline efficiency, but keep >= 2 grid steps
    # when possible (megacore) and never collapse to a single whole-array block.
    for tm in (1024, 512, 256, 128, 64, 32, 16, 8):
        if m >= 2 * tm:
            return tm
    return 8


def _pad_last(a, cp):
    pad = cp - a.shape[-1]
    if pad == 0:
        return a
    cfg = [(0, 0)] * (a.ndim - 1) + [(0, pad)]
    return jnp.pad(a, cfg)


def _bn_scale_shift(s, sq, count, gamma, beta):
    # TODO(synk): sumsq/m - mean^2 can suffer cancellation for large activation means; a centered
    #             second pass (or Welford) would be more robust at scale.
    mean = s / count
    var = jnp.maximum(sq / count - mean * mean, 0.0)
    scale = gamma * jax.lax.rsqrt(var + EPS)
    shift = beta - mean * scale
    return scale[None, :].astype(jnp.float32), shift[None, :].astype(jnp.float32)


# ----------------------------- kernels -----------------------------------


def _conv1x1_stats_kernel(x_ref, w_ref, y_ref, stats_ref):
    # (tm, Cin) bf16 @ (Cin, Cp) bf16 -> f32, plus fused per-tile channel sum / sum-of-squares.
    y = jnp.dot(x_ref[...], w_ref[...], preferred_element_type=jnp.float32)
    y_ref[...] = y
    stats_ref[...] = jnp.zeros_like(stats_ref)          # (8, Cp): row0 = sum, row1 = sumsq
    stats_ref[0:1, :] = jnp.sum(y, axis=0, keepdims=True)
    stats_ref[1:2, :] = jnp.sum(y * y, axis=0, keepdims=True)


def _conv3x3_s2_kernel(r0_ref, r1_ref, r2_ref, w_ref, scale_ref, shift_ref, y_ref, stats_ref):
    # One output row (W2, Cp) of the stride-2 3x3 conv for one image.
    # r{0,1,2}_ref: the three contributing input rows (W, Cp) of y1 (pre-BN conv1 output).
    # Stage-1 BN affine + ReLU is applied to each loaded row (fused consumer); stride-2 column
    # taps are extracted with strided loads; the three kx taps per kernel row are concatenated
    # along lanes and fed to a single K=3*Cp MXU matmul (three matmuls total per output row).
    # w_ref: (3, 3*Cp, Cp) bf16, rows within each ky block ordered kx-major then input channel.
    w2_out, cp = y_ref.shape
    oy = pl.program_id(1)
    scale = scale_ref[...]                                # (1, Cp)
    shift = shift_ref[...]
    top_valid = jnp.where(oy > 0, 1.0, 0.0).astype(jnp.float32)  # top row is the zero pad at oy==0

    def taps(row_ref, valid):
        ev = row_ref[pl.ds(0, w2_out, stride=2), :]       # cols 0,2,...,W-2  -> kx = 1
        od = row_ref[pl.ds(1, w2_out, stride=2), :]       # cols 1,3,...,W-1  -> kx = 2
        t1 = jnp.maximum(ev * scale + shift, 0.0) * valid
        t2 = jnp.maximum(od * scale + shift, 0.0) * valid
        # kx = 0 tap: shift t2 down one output position and insert the left zero pad at ox == 0.
        t0 = pltpu.roll(t2, shift=1, axis=0)
        ridx = jax.lax.broadcasted_iota(jnp.int32, (w2_out, cp), 0)
        t0 = jnp.where(ridx == 0, 0.0, t0)
        # Lane-concat in kx-major order to match the (3*Cp, Cp) weight block layout.
        return jnp.concatenate(
            [t0.astype(jnp.bfloat16), t1.astype(jnp.bfloat16), t2.astype(jnp.bfloat16)],
            axis=-1)                                      # (W2, 3*Cp)

    acc = jnp.zeros((w2_out, cp), jnp.float32)
    for ky, (row_ref, valid) in enumerate(((r0_ref, top_valid), (r1_ref, 1.0), (r2_ref, 1.0))):
        acc += jnp.dot(taps(row_ref, valid), w_ref[ky], preferred_element_type=jnp.float32)

    y_ref[...] = acc
    stats_ref[...] = jnp.zeros_like(stats_ref)            # (8, Cp): row0 = sum, row1 = sumsq
    stats_ref[0:1, :] = jnp.sum(acc, axis=0, keepdims=True)
    stats_ref[1:2, :] = jnp.sum(acc * acc, axis=0, keepdims=True)


def _bn_relu_kernel(x_ref, scale_ref, shift_ref, o_ref):
    o_ref[...] = jnp.maximum(x_ref[...] * scale_ref[...] + shift_ref[...], 0.0)


# ----------------------------- pallas_call wrappers -----------------------------------


def _conv1x1_stats(x2d_bf16, w1p_bf16):
    m, cin = x2d_bf16.shape
    cp = w1p_bf16.shape[1]
    tm = _pick_tile_m(m)
    mp = _round_up(m, tm)
    if mp != m:
        x2d_bf16 = jnp.pad(x2d_bf16, ((0, mp - m), (0, 0)))  # zero rows: no effect on sums
    g = mp // tm
    y1, stats = pl.pallas_call(
        _conv1x1_stats_kernel,
        out_shape=(jax.ShapeDtypeStruct((mp, cp), jnp.float32),
                   jax.ShapeDtypeStruct((g, 8, cp), jnp.float32)),
        grid=(g,),
        in_specs=[pl.BlockSpec((tm, cin), lambda i: (i, 0)),
                  pl.BlockSpec((cin, cp), lambda i: (0, 0))],
        out_specs=(pl.BlockSpec((tm, cp), lambda i: (i, 0)),
                   pl.BlockSpec((None, 8, cp), lambda i: (i, 0, 0))),
        compiler_params=pltpu.CompilerParams(
            dimension_semantics=("parallel",),
            vmem_limit_bytes=32 * 1024 * 1024),
    )(x2d_bf16, w1p_bf16)
    ssum = jnp.sum(stats[:, 0, :], axis=0)
    ssq = jnp.sum(stats[:, 1, :], axis=0)
    return y1[:m], ssum, ssq


def _row_spec(dy, w, cp):
    def idx(ni, oy):
        return (ni, jnp.maximum(2 * oy + dy - 1, 0), 0, 0)
    return pl.BlockSpec((None, None, w, cp), idx)


def _conv3x3_s2_stats(y1_nhwc, w2r_bf16, scale1, shift1):
    n, h, w, cp = y1_nhwc.shape
    h2, w2o = h // 2, w // 2
    y2, stats = pl.pallas_call(
        _conv3x3_s2_kernel,
        out_shape=(jax.ShapeDtypeStruct((n, h2, w2o, cp), jnp.float32),
                   jax.ShapeDtypeStruct((n, h2, 8, cp), jnp.float32)),
        grid=(n, h2),
        in_specs=[_row_spec(0, w, cp), _row_spec(1, w, cp), _row_spec(2, w, cp),
                  pl.BlockSpec((3, 3 * cp, cp), lambda ni, oy: (0, 0, 0)),
                  pl.BlockSpec((1, cp), lambda ni, oy: (0, 0)),
                  pl.BlockSpec((1, cp), lambda ni, oy: (0, 0))],
        out_specs=(pl.BlockSpec((None, None, w2o, cp), lambda ni, oy: (ni, oy, 0, 0)),
                   pl.BlockSpec((None, None, 8, cp), lambda ni, oy: (ni, oy, 0, 0))),
        compiler_params=pltpu.CompilerParams(
            dimension_semantics=("parallel", "parallel"),
            vmem_limit_bytes=32 * 1024 * 1024),
    )(y1_nhwc, y1_nhwc, y1_nhwc, w2r_bf16, scale1, shift1)
    ssum = jnp.sum(stats[:, :, 0, :], axis=(0, 1))
    ssq = jnp.sum(stats[:, :, 1, :], axis=(0, 1))
    return y2, ssum, ssq


def _bn_relu(x2d, scale, shift):
    m, cp = x2d.shape
    tm = _pick_tile_m(m)
    mp = _round_up(m, tm)
    if mp != m:
        x2d = jnp.pad(x2d, ((0, mp - m), (0, 0)))
    out = pl.pallas_call(
        _bn_relu_kernel,
        out_shape=jax.ShapeDtypeStruct((mp, cp), jnp.float32),
        grid=(mp // tm,),
        in_specs=[pl.BlockSpec((tm, cp), lambda i: (i, 0)),
                  pl.BlockSpec((1, cp), lambda i: (0, 0)),
                  pl.BlockSpec((1, cp), lambda i: (0, 0))],
        out_specs=pl.BlockSpec((tm, cp), lambda i: (i, 0)),
        compiler_params=pltpu.CompilerParams(dimension_semantics=("parallel",)),
    )(x2d, scale, shift)
    return out[:m]


# ----------------------------- forward pass -----------------------------------


def transition_block_forward(x_nchw, params, down_sample=True):
    """Pallas implementation of TransitionBlock.forward. Input/output are NCHW (PyTorch)."""
    n, cin, h, w = x_nchw.shape
    cout = params["w1"].shape[1]
    cp = _round_up(cout, LANES)          # lane-dense channel padding

    x = jnp.transpose(x_nchw, (0, 2, 3, 1)).astype(jnp.float32)  # NHWC

    w1p = _pad_last(params["w1"], cp).astype(jnp.bfloat16)
    gamma1 = _pad_last(params["gamma1"], cp)
    beta1 = _pad_last(params["beta1"], cp)

    # --- Conv1x1 (bias=False) + fused batch stats ---
    m = n * h * w
    y1, s1, sq1 = _conv1x1_stats(x.reshape(m, cin).astype(jnp.bfloat16), w1p)
    scale1, shift1 = _bn_scale_shift(s1, sq1, m, gamma1, beta1)

    if not down_sample:
        a1 = _bn_relu(y1, scale1, shift1).reshape(n, h, w, cp)
        return jnp.transpose(a1[..., :cout], (0, 3, 1, 2))

    assert h % 2 == 0 and w % 2 == 0, "down-sample path assumes even spatial dims"

    # --- Conv3x3 stride=2 pad=1 (bias=False), BN1+ReLU fused on the input taps, stats fused ---
    # Weight (3, 3, Cout, Cout) -> padded (3, 3, Cp, Cp) -> (3, 3*Cp, Cp): kx-major, then cin.
    w2p = jnp.pad(params["w2"],
                  ((0, 0), (0, 0), (0, cp - cout), (0, cp - cout)))
    w2r = w2p.reshape(3, 3 * cp, cp).astype(jnp.bfloat16)
    gamma2 = _pad_last(params["gamma2"], cp)
    beta2 = _pad_last(params["beta2"], cp)

    y2, s2, sq2 = _conv3x3_s2_stats(y1.reshape(n, h, w, cp), w2r, scale1, shift1)
    h2, w2o = h // 2, w // 2
    m2 = n * h2 * w2o
    scale2, shift2 = _bn_scale_shift(s2, sq2, m2, gamma2, beta2)

    # --- BN2 affine + ReLU over the (4x smaller) conv2 output ---
    a2 = _bn_relu(y2.reshape(m2, cp), scale2, shift2).reshape(n, h2, w2o, cp)
    return jnp.transpose(a2[..., :cout], (0, 3, 1, 2))


# ----------------------------- pure-JAX f32 reference -----------------------------------


def reference_forward(x_nchw, params, down_sample=True):
    x = jnp.transpose(x_nchw, (0, 2, 3, 1)).astype(jnp.float32)

    def bn_relu(y, gamma, beta):
        mean = jnp.mean(y, axis=(0, 1, 2))
        var = jnp.mean((y - mean) ** 2, axis=(0, 1, 2))
        return jnp.maximum((y - mean) * jax.lax.rsqrt(var + EPS) * gamma + beta, 0.0)

    y1 = jax.lax.conv_general_dilated(
        x, params["w1"][None, None], (1, 1), "VALID",
        dimension_numbers=("NHWC", "HWIO", "NHWC"))
    a1 = bn_relu(y1, params["gamma1"], params["beta1"])
    if not down_sample:
        return jnp.transpose(a1, (0, 3, 1, 2))
    y2 = jax.lax.conv_general_dilated(
        a1, params["w2"], (2, 2), ((1, 1), (1, 1)),
        dimension_numbers=("NHWC", "HWIO", "NHWC"))
    a2 = bn_relu(y2, params["gamma2"], params["beta2"])
    return jnp.transpose(a2, (0, 3, 1, 2))


# ----------------------------- main -----------------------------------


def init_params(key, in_channels, out_channels):
    k1, k2, k3, k4, k5, k6 = jax.random.split(key, 6)
    return {
        # conv1: PyTorch weight (Cout, Cin, 1, 1) -> stored as (Cin, Cout)
        "w1": jax.random.normal(k1, (in_channels, out_channels), jnp.float32)
        * (in_channels ** -0.5),
        "gamma1": 1.0 + 0.1 * jax.random.normal(k2, (out_channels,), jnp.float32),
        "beta1": 0.1 * jax.random.normal(k3, (out_channels,), jnp.float32),
        # conv2: PyTorch weight (Cout, Cout, 3, 3) -> stored HWIO (3, 3, Cout, Cout)
        "w2": jax.random.normal(k4, (3, 3, out_channels, out_channels), jnp.float32)
        * ((9 * out_channels) ** -0.5),
        "gamma2": 1.0 + 0.1 * jax.random.normal(k5, (out_channels,), jnp.float32),
        "beta2": 0.1 * jax.random.normal(k6, (out_channels,), jnp.float32),
    }


if __name__ == "__main__":
    key = jax.random.PRNGKey(0)
    kx, kp = jax.random.split(key)

    in_channels, out_channels = 4, 8
    x = jax.random.normal(kx, (2, in_channels, 16, 16), jnp.float32)  # NCHW like PyTorch
    params = init_params(kp, in_channels, out_channels)

    fwd = jax.jit(transition_block_forward, static_argnames=("down_sample",))

    # Tolerance reflects bf16 MXU operands (f32 accumulation / f32 BN) vs the pure f32 reference.
    out = jax.block_until_ready(fwd(x, params, down_sample=True))
    ref = jax.block_until_ready(reference_forward(x, params, down_sample=True))
    assert out.shape == (2, out_channels, 8, 8), out.shape
    assert jnp.allclose(out, ref, atol=5e-2, rtol=5e-2), float(jnp.max(jnp.abs(out - ref)))

    out_nd = jax.block_until_ready(fwd(x, params, down_sample=False))
    ref_nd = reference_forward(x, params, down_sample=False)
    assert out_nd.shape == (2, out_channels, 16, 16), out_nd.shape
    assert jnp.allclose(out_nd, ref_nd, atol=5e-2, rtol=5e-2), float(jnp.max(jnp.abs(out_nd - ref_nd)))

    print("KERNEL_OK")
</pallas_src>

<mosaic_0001>
module attributes {stable_mosaic.version = 11 : i64} {
  func.func @_conv1x1_stats_kernel(%arg0: i32, %arg1: memref<256x4xbf16, #tpu.memory_space<vmem>>, %arg2: memref<4x128xbf16, #tpu.memory_space<vmem>>, %arg3: memref<256x128xf32, #tpu.memory_space<vmem>>, %arg4: memref<1x8x128xf32, #tpu.memory_space<vmem>>) attributes {dimension_semantics = [#tpu.dimension_semantics<parallel>], iteration_bounds = array<i64: 2>, scalar_prefetch = 0 : i64, scratch_operands = 0 : i64, tpu.core_type = #tpu.core_type<tc>, window_params = [{transform_indices = @transform_0, window_bounds = array<i64: 256, 4>}, {pipeline_mode = #tpu.pipeline_mode<synchronous>, transform_indices = @transform_1, window_bounds = array<i64: 4, 128>}, {transform_indices = @transform_2, window_bounds = array<i64: 256, 128>}, {transform_indices = @transform_3, window_bounds = array<i64: 1, 8, 128>}]} {
    %c0 = arith.constant 0 : index
    %c0_0 = arith.constant 0 : index
    %0 = vector.load %arg1[%c0, %c0_0] : memref<256x4xbf16, #tpu.memory_space<vmem>>, vector<256x4xbf16>
    %c0_1 = arith.constant 0 : index
    %c0_2 = arith.constant 0 : index
    %1 = vector.load %arg2[%c0_1, %c0_2] : memref<4x128xbf16, #tpu.memory_space<vmem>>, vector<4x128xbf16>
    %cst = arith.constant dense<0.000000e+00> : vector<256x128xf32>
    %2 = tpu.matmul %0, %1, %cst {dimension_numbers = #tpu.dot_dimension_numbers<[1], [0], [0], [1], [0, 0, 1, 1], [], []>} : vector<256x4xbf16>, vector<4x128xbf16>, vector<256x128xf32> -> vector<256x128xf32>
    %c0_3 = arith.constant 0 : index
    %c0_4 = arith.constant 0 : index
    %3 = vector.load %arg3[%c0_3, %c0_4] : memref<256x128xf32, #tpu.memory_space<vmem>>, vector<256x128xf32>
    tpu.vector_store %arg3[%c0_3, %c0_4], %2 {strides = array<i32>} : memref<256x128xf32, #tpu.memory_space<vmem>>, vector<256x128xf32>,
    %cst_5 = arith.constant 0.000000e+00 : f32
    %4 = vector.broadcast %cst_5 : f32 to vector<8x128xf32>
    %c0_6 = arith.constant 0 : index
    %c0_7 = arith.constant 0 : index
    %c0_8 = arith.constant 0 : index
    %5 = vector.load %arg4[%c0_6, %c0_7, %c0_8] : memref<1x8x128xf32, #tpu.memory_space<vmem>>, vector<1x8x128xf32>
    %6 = vector.shape_cast %5 : vector<1x8x128xf32> to vector<8x128xf32>
    %7 = vector.shape_cast %4 : vector<8x128xf32> to vector<1x8x128xf32>
    tpu.vector_store %arg4[%c0_6, %c0_7, %c0_8], %7 {strides = array<i32>} : memref<1x8x128xf32, #tpu.memory_space<vmem>>, vector<1x8x128xf32>,
    %cst_9 = arith.constant dense<0.000000e+00> : vector<128xf32>
    %8 = vector.multi_reduction <add>, %2, %cst_9 [0] : vector<256x128xf32> to vector<128xf32>
    %9 = vector.shape_cast %8 : vector<128xf32> to vector<1x128xf32>
    %c0_10 = arith.constant 0 : index
    %c0_11 = arith.constant 0 : index
    %c0_12 = arith.constant 0 : index
    %10 = vector.load %arg4[%c0_10, %c0_11, %c0_12] : memref<1x8x128xf32, #tpu.memory_space<vmem>>, vector<1x1x128xf32>
    %11 = vector.shape_cast %10 : vector<1x1x128xf32> to vector<1x128xf32>
    %12 = vector.shape_cast %9 : vector<1x128xf32> to vector<1x1x128xf32>
    tpu.vector_store %arg4[%c0_10, %c0_11, %c0_12], %12 {strides = array<i32>} : memref<1x8x128xf32, #tpu.memory_space<vmem>>, vector<1x1x128xf32>,
    %13 = arith.mulf %2, %2 : vector<256x128xf32>
    %cst_13 = arith.constant dense<0.000000e+00> : vector<128xf32>
    %14 = vector.multi_reduction <add>, %13, %cst_13 [0] : vector<256x128xf32> to vector<128xf32>
    %15 = vector.shape_cast %14 : vector<128xf32> to vector<1x128xf32>
    %c0_14 = arith.constant 0 : index
    %c1 = arith.constant 1 : index
    %c0_15 = arith.constant 0 : index
    %16 = vector.load %arg4[%c0_14, %c1, %c0_15] : memref<1x8x128xf32, #tpu.memory_space<vmem>>, vector<1x1x128xf32>
    %17 = vector.shape_cast %16 : vector<1x1x128xf32> to vector<1x128xf32>
    %18 = vector.shape_cast %15 : vector<1x128xf32> to vector<1x1x128xf32>
    tpu.vector_store %arg4[%c0_14, %c1, %c0_15], %18 {strides = array<i32>} : memref<1x8x128xf32, #tpu.memory_space<vmem>>, vector<1x1x128xf32>,
    return
  }
  func.func @transform_0(%arg0: i32) -> (i32, i32) {
    %c0_i32 = arith.constant 0 : i32
    %c0_i32_0 = arith.constant 0 : i32
    return %arg0, %c0_i32 : i32, i32
  }
  func.func @transform_1(%arg0: i32) -> (i32, i32) {
    %c0_i32 = arith.constant 0 : i32
    %c0_i32_0 = arith.constant 0 : i32
    %c0_i32_1 = arith.constant 0 : i32
    return %c0_i32, %c0_i32_0 : i32, i32
  }
  func.func @transform_2(%arg0: i32) -> (i32, i32) {
    %c0_i32 = arith.constant 0 : i32
    %c0_i32_0 = arith.constant 0 : i32
    return %arg0, %c0_i32 : i32, i32
  }
  func.func @transform_3(%arg0: i32) -> (i32, i32, i32) {
    %c0_i32 = arith.constant 0 : i32
    %c0_i32_0 = arith.constant 0 : i32
    %c0_i32_1 = arith.constant 0 : i32
    return %arg0, %c0_i32, %c0_i32_0 : i32, i32, i32
  }
}

module attributes {stable_mosaic.version = 11 : i64} {
  func.func @_conv3x3_s2_kernel(%arg0: i32, %arg1: i32, %arg2: memref<1x1x16x128xf32, #tpu.memory_space<vmem>>, %arg3: memref<1x1x16x128xf32, #tpu.memory_space<vmem>>, %arg4: memref<1x1x16x128xf32, #tpu.memory_space<vmem>>, %arg5: memref<3x384x128xbf16, #tpu.memory_space<vmem>>, %arg6: memref<1x128xf32, #tpu.memory_space<vmem>>, %arg7: memref<1x128xf32, #tpu.memory_space<vmem>>, %arg8: memref<1x1x8x128xf32, #tpu.memory_space<vmem>>, %arg9: memref<1x1x8x128xf32, #tpu.memory_space<vmem>>) attributes {dimension_semantics = [#tpu.dimension_semantics<parallel>, #tpu.dimension_semantics<parallel>], iteration_bounds = array<i64: 2, 8>, scalar_prefetch = 0 : i64, scratch_operands = 0 : i64, tpu.core_type = #tpu.core_type<tc>, window_params = [{transform_indices = @transform_0, window_bounds = array<i64: 1, 1, 16, 128>}, {transform_indices = @transform_1, window_bounds = array<i64: 1, 1, 16, 128>}, {transform_indices = @transform_2, window_bounds = array<i64: 1, 1, 16, 128>}, {pipeline_mode = #tpu.pipeline_mode<synchronous>, transform_indices = @transform_3, window_bounds = array<i64: 3, 384, 128>}, {pipeline_mode = #tpu.pipeline_mode<synchronous>, transform_indices = @transform_4, window_bounds = array<i64: 1, 128>}, {pipeline_mode = #tpu.pipeline_mode<synchronous>, transform_indices = @transform_5, window_bounds = array<i64: 1, 128>}, {transform_indices = @transform_6, window_bounds = array<i64: 1, 1, 8, 128>}, {transform_indices = @transform_7, window_bounds = array<i64: 1, 1, 8, 128>}]} {
    %c0 = arith.constant 0 : index
    %c0_0 = arith.constant 0 : index
    %0 = vector.load %arg6[%c0, %c0_0] : memref<1x128xf32, #tpu.memory_space<vmem>>, vector<1x128xf32>
    %c0_1 = arith.constant 0 : index
    %c0_2 = arith.constant 0 : index
    %1 = vector.load %arg7[%c0_1, %c0_2] : memref<1x128xf32, #tpu.memory_space<vmem>>, vector<1x128xf32>
    %c0_i32 = arith.constant 0 : i32
    %2 = arith.cmpi sgt, %arg1, %c0_i32 : i32
    %cst = arith.constant 1.000000e+00 : f32
    %cst_3 = arith.constant 0.000000e+00 : f32
    %3 = arith.select %2, %cst, %cst_3 : f32
    %cst_4 = arith.constant 0.000000e+00 : f32
    %4 = vector.broadcast %cst_4 : f32 to vector<8x128xf32>
    %c0_5 = arith.constant 0 : index
    %c0_6 = arith.constant 0 : index
    %c0_7 = arith.constant 0 : index
    %c0_8 = arith.constant 0 : index
    %5 = tpu.strided_load %arg2[%c0_5, %c0_6, %c0_7, %c0_8] {strides = array<i32: 1, 1, 2, 1>} : memref<1x1x16x128xf32, #tpu.memory_space<vmem>>, vector<1x1x8x128xf32>
    %6 = vector.shape_cast %5 : vector<1x1x8x128xf32> to vector<8x128xf32>
    %c0_9 = arith.constant 0 : index
    %c0_10 = arith.constant 0 : index
    %c1 = arith.constant 1 : index
    %c0_11 = arith.constant 0 : index
    %7 = tpu.strided_load %arg2[%c0_9, %c0_10, %c1, %c0_11] {strides = array<i32: 1, 1, 2, 1>} : memref<1x1x16x128xf32, #tpu.memory_space<vmem>>, vector<1x1x8x128xf32>
    %8 = vector.shape_cast %7 : vector<1x1x8x128xf32> to vector<8x128xf32>
    %9 = vector.broadcast %0 : vector<1x128xf32> to vector<8x128xf32>
    %10 = arith.mulf %6, %9 : vector<8x128xf32>
    %11 = vector.broadcast %1 : vector<1x128xf32> to vector<8x128xf32>
    %12 = arith.addf %10, %11 : vector<8x128xf32>
    %cst_12 = arith.constant 0.000000e+00 : f32
    %13 = vector.broadcast %cst_12 : f32 to vector<8x128xf32>
    %14 = arith.maximumf %12, %13 : vector<8x128xf32>
    %15 = vector.broadcast %3 : f32 to vector<8x128xf32>
    %16 = arith.mulf %14, %15 : vector<8x128xf32>
    %17 = vector.broadcast %0 : vector<1x128xf32> to vector<8x128xf32>
    %18 = arith.mulf %8, %17 : vector<8x128xf32>
    %19 = vector.broadcast %1 : vector<1x128xf32> to vector<8x128xf32>
    %20 = arith.addf %18, %19 : vector<8x128xf32>
    %cst_13 = arith.constant 0.000000e+00 : f32
    %21 = vector.broadcast %cst_13 : f32 to vector<8x128xf32>
    %22 = arith.maximumf %20, %21 : vector<8x128xf32>
    %23 = vector.broadcast %3 : f32 to vector<8x128xf32>
    %24 = arith.mulf %22, %23 : vector<8x128xf32>
    %c1_i32 = arith.constant 1 : i32
    %25 = tpu.dynamic_rotate %24 by %c1_i32 dim 0 : vector<8x128xf32>, i32 -> vector<8x128xf32>
    %26 = tpu.iota {dimensions = array<i32: 0>} : vector<8x128xi32>
    %c0_i32_14 = arith.constant 0 : i32
    %27 = vector.broadcast %c0_i32_14 : i32 to vector<8x128xi32>
    %28 = arith.cmpi eq, %26, %27 : vector<8x128xi32>
    %cst_15 = arith.constant 0.000000e+00 : f32
    %29 = vector.broadcast %cst_15 : f32 to vector<8x128xf32>
    %30 = arith.select %28, %29, %25 : vector<8x128xi1>, vector<8x128xf32>
    %31 = arith.truncf %30 : vector<8x128xf32> to vector<8x128xbf16>
    %32 = arith.truncf %16 : vector<8x128xf32> to vector<8x128xbf16>
    %33 = arith.truncf %24 : vector<8x128xf32> to vector<8x128xbf16>
    %34 = tpu.concatenate %31, %32, %33 in 1 : vector<8x128xbf16>, vector<8x128xbf16>, vector<8x128xbf16> -> vector<8x384xbf16>
    %c0_16 = arith.constant 0 : index
    %c0_17 = arith.constant 0 : index
    %c0_18 = arith.constant 0 : index
    %35 = vector.load %arg5[%c0_16, %c0_17, %c0_18] : memref<3x384x128xbf16, #tpu.memory_space<vmem>>, vector<1x384x128xbf16>
    %36 = vector.shape_cast %35 : vector<1x384x128xbf16> to vector<384x128xbf16>
    %cst_19 = arith.constant dense<0.000000e+00> : vector<8x128xf32>
    %37 = tpu.matmul %34, %36, %cst_19 {dimension_numbers = #tpu.dot_dimension_numbers<[1], [0], [0], [1], [0, 0, 1, 1], [], []>} : vector<8x384xbf16>, vector<384x128xbf16>, vector<8x128xf32> -> vector<8x128xf32>
    %38 = arith.addf %4, %37 : vector<8x128xf32>
    %c0_20 = arith.constant 0 : index
    %c0_21 = arith.constant 0 : index
    %c0_22 = arith.constant 0 : index
    %c0_23 = arith.constant 0 : index
    %39 = tpu.strided_load %arg3[%c0_20, %c0_21, %c0_22, %c0_23] {strides = array<i32: 1, 1, 2, 1>} : memref<1x1x16x128xf32, #tpu.memory_space<vmem>>, vector<1x1x8x128xf32>
    %40 = vector.shape_cast %39 : vector<1x1x8x128xf32> to vector<8x128xf32>
    %c0_24 = arith.constant 0 : index
    %c0_25 = arith.constant 0 : index
    %c1_26 = arith.constant 1 : index
    %c0_27 = arith.constant 0 : index
    %41 = tpu.strided_load %arg3[%c0_24, %c0_25, %c1_26, %c0_27] {strides = array<i32: 1, 1, 2, 1>} : memref<1x1x16x128xf32, #tpu.memory_space<vmem>>, vector<1x1x8x128xf32>
    %42 = vector.shape_cast %41 : vector<1x1x8x128xf32> to vector<8x128xf32>
    %43 = vector.broadcast %0 : vector<1x128xf32> to vector<8x128xf32>
    %44 = arith.mulf %40, %43 : vector<8x128xf32>
    %45 = vector.broadcast %1 : vector<1x128xf32> to vector<8x128xf32>
    %46 = arith.addf %44, %45 : vector<8x128xf32>
    %cst_28 = arith.constant 0.000000e+00 : f32
    %47 = vector.broadcast %cst_28 : f32 to vector<8x128xf32>
    %48 = arith.maximumf %46, %47 : vector<8x128xf32>
    %cst_29 = arith.constant 1.000000e+00 : f32
    %49 = vector.broadcast %cst_29 : f32 to vector<8x128xf32>
    %50 = arith.mulf %48, %49 : vector<8x128xf32>
    %51 = vector.broadcast %0 : vector<1x128xf32> to vector<8x128xf32>
    %52 = arith.mulf %42, %51 : vector<8x128xf32>
    %53 = vector.broadcast %1 : vector<1x128xf32> to vector<8x128xf32>
    %54 = arith.addf %52, %53 : vector<8x128xf32>
    %cst_30 = arith.constant 0.000000e+00 : f32
    %55 = vector.broadcast %cst_30 : f32 to vector<8x128xf32>
    %56 = arith.maximumf %54, %55 : vector<8x128xf32>
    %cst_31 = arith.constant 1.000000e+00 : f32
    %57 = vector.broadcast %cst_31 : f32 to vector<8x128xf32>
    %58 = arith.mulf %56, %57 : vector<8x128xf32>
    %c1_i32_32 = arith.constant 1 : i32
    %59 = tpu.dynamic_rotate %58 by %c1_i32_32 dim 0 : vector<8x128xf32>, i32 -> vector<8x128xf32>
    %60 = tpu.iota {dimensions = array<i32: 0>} : vector<8x128xi32>
    %c0_i32_33 = arith.constant 0 : i32
    %61 = vector.broadcast %c0_i32_33 : i32 to vector<8x128xi32>
    %62 = arith.cmpi eq, %60, %61 : vector<8x128xi32>
    %cst_34 = arith.constant 0.000000e+00 : f32
    %63 = vector.broadcast %cst_34 : f32 to vector<8x128xf32>
    %64 = arith.select %62, %63, %59 : vector<8x128xi1>, vector<8x128xf32>
    %65 = arith.truncf %64 : vector<8x128xf32> to vector<8x128xbf16>
    %66 = arith.truncf %50 : vector<8x128xf32> to vector<8x128xbf16>
    %67 = arith.truncf %58 : vector<8x128xf32> to vector<8x128xbf16>
    %68 = tpu.concatenate %65, %66, %67 in 1 : vector<8x128xbf16>, vector<8x128xbf16>, vector<8x128xbf16> -> vector<8x384xbf16>
    %c1_35 = arith.constant 1 : index
    %c0_36 = arith.constant 0 : index
    %c0_37 = arith.constant 0 : index
    %69 = vector.load %arg5[%c1_35, %c0_36, %c0_37] : memref<3x384x128xbf16, #tpu.memory_space<vmem>>, vector<1x384x128xbf16>
    %70 = vector.shape_cast %69 : vector<1x384x128xbf16> to vector<384x128xbf16>
    %cst_38 = arith.constant dense<0.000000e+00> : vector<8x128xf32>
    %71 = tpu.matmul %68, %70, %cst_38 {dimension_numbers = #tpu.dot_dimension_numbers<[1], [0], [0], [1], [0, 0, 1, 1], [], []>} : vector<8x384xbf16>, vector<384x128xbf16>, vector<8x128xf32> -> vector<8x128xf32>
    %72 = arith.addf %38, %71 : vector<8x128xf32>
    %c0_39 = arith.constant 0 : index
    %c0_40 = arith.constant 0 : index
    %c0_41 = arith.constant 0 : index
    %c0_42 = arith.constant 0 : index
    %73 = tpu.strided_load %arg4[%c0_39, %c0_40, %c0_41, %c0_42] {strides = array<i32: 1, 1, 2, 1>} : memref<1x1x16x128xf32, #tpu.memory_space<vmem>>, vector<1x1x8x128xf32>
    %74 = vector.shape_cast %73 : vector<1x1x8x128xf32> to vector<8x128xf32>
    %c0_43 = arith.constant 0 : index
    %c0_44 = arith.constant 0 : index
    %c1_45 = arith.constant 1 : index
    %c0_46 = arith.constant 0 : index
    %75 = tpu.strided_load %arg4[%c0_43, %c0_44, %c1_45, %c0_46] {strides = array<i32: 1, 1, 2, 1>} : memref<1x1x16x128xf32, #tpu.memory_space<vmem>>, vector<1x1x8x128xf32>
    %76 = vector.shape_cast %75 : vector<1x1x8x128xf32> to vector<8x128xf32>
    %77 = vector.broadcast %0 : vector<1x128xf32> to vector<8x128xf32>
    %78 = arith.mulf %74, %77 : vector<8x128xf32>
    %79 = vector.broadcast %1 : vector<1x128xf32> to vector<8x128xf32>
    %80 = arith.addf %78, %79 : vector<8x128xf32>
    %cst_47 = arith.constant 0.000000e+00 : f32
    %81 = vector.broadcast %cst_47 : f32 to vector<8x128xf32>
    %82 = arith.maximumf %80, %81 : vector<8x128xf32>
    %cst_48 = arith.constant 1.000000e+00 : f32
    %83 = vector.broadcast %cst_48 : f32 to vector<8x128xf32>
    %84 = arith.mulf %82, %83 : vector<8x128xf32>
    %85 = vector.broadcast %0 : vector<1x128xf32> to vector<8x128xf32>
    %86 = arith.mulf %76, %85 : vector<8x128xf32>
    %87 = vector.broadcast %1 : vector<1x128xf32> to vector<8x128xf32>
    %88 = arith.addf %86, %87 : vector<8x128xf32>
    %cst_49 = arith.constant 0.000000e+00 : f32
    %89 = vector.broadcast %cst_49 : f32 to vector<8x128xf32>
    %90 = arith.maximumf %88, %89 : vector<8x128xf32>
    %cst_50 = arith.constant 1.000000e+00 : f32
    %91 = vector.broadcast %cst_50 : f32 to vector<8x128xf32>
    %92 = arith.mulf %90, %91 : vector<8x128xf32>
    %c1_i32_51 = arith.constant 1 : i32
    %93 = tpu.dynamic_rotate %92 by %c1_i32_51 dim 0 : vector<8x128xf32>, i32 -> vector<8x128xf32>
    %94 = tpu.iota {dimensions = array<i32: 0>} : vector<8x128xi32>
    %c0_i32_52 = arith.constant 0 : i32
    %95 = vector.broadcast %c0_i32_52 : i32 to vector<8x128xi32>
    %96 = arith.cmpi eq, %94, %95 : vector<8x128xi32>
    %cst_53 = arith.constant 0.000000e+00 : f32
    %97 = vector.broadcast %cst_53 : f32 to vector<8x128xf32>
    %98 = arith.select %96, %97, %93 : vector<8x128xi1>, vector<8x128xf32>
    %99 = arith.truncf %98 : vector<8x128xf32> to vector<8x128xbf16>
    %100 = arith.truncf %84 : vector<8x128xf32> to vector<8x128xbf16>
    %101 = arith.truncf %92 : vector<8x128xf32> to vector<8x128xbf16>
    %102 = tpu.concatenate %99, %100, %101 in 1 : vector<8x128xbf16>, vector<8x128xbf16>, vector<8x128xbf16> -> vector<8x384xbf16>
    %c2 = arith.constant 2 : index
    %c0_54 = arith.constant 0 : index
    %c0_55 = arith.constant 0 : index
    %103 = vector.load %arg5[%c2, %c0_54, %c0_55] : memref<3x384x128xbf16, #tpu.memory_space<vmem>>, vector<1x384x128xbf16>
    %104 = vector.shape_cast %103 : vector<1x384x128xbf16> to vector<384x128xbf16>
    %cst_56 = arith.constant dense<0.000000e+00> : vector<8x128xf32>
    %105 = tpu.matmul %102, %104, %cst_56 {dimension_numbers = #tpu.dot_dimension_numbers<[1], [0], [0], [1], [0, 0, 1, 1], [], []>} : vector<8x384xbf16>, vector<384x128xbf16>, vector<8x128xf32> -> vector<8x128xf32>
    %106 = arith.addf %72, %105 : vector<8x128xf32>
    %c0_57 = arith.constant 0 : index
    %c0_58 = arith.constant 0 : index
    %c0_59 = arith.constant 0 : index
    %c0_60 = arith.constant 0 : index
    %107 = vector.load %arg8[%c0_57, %c0_58, %c0_59, %c0_60] : memref<1x1x8x128xf32, #tpu.memory_space<vmem>>, vector<1x1x8x128xf32>
    %108 = vector.shape_cast %107 : vector<1x1x8x128xf32> to vector<8x128xf32>
    %109 = vector.shape_cast %106 : vector<8x128xf32> to vector<1x1x8x128xf32>
    tpu.vector_store %arg8[%c0_57, %c0_58, %c0_59, %c0_60], %109 {strides = array<i32>} : memref<1x1x8x128xf32, #tpu.memory_space<vmem>>, vector<1x1x8x128xf32>,
    %cst_61 = arith.constant 0.000000e+00 : f32
    %110 = vector.broadcast %cst_61 : f32 to vector<8x128xf32>
    %c0_62 = arith.constant 0 : index
    %c0_63 = arith.constant 0 : index
    %c0_64 = arith.constant 0 : index
    %c0_65 = arith.constant 0 : index
    %111 = vector.load %arg9[%c0_62, %c0_63, %c0_64, %c0_65] : memref<1x1x8x128xf32, #tpu.memory_space<vmem>>, vector<1x1x8x128xf32>
    %112 = vector.shape_cast %111 : vector<1x1x8x128xf32> to vector<8x128xf32>
    %113 = vector.shape_cast %110 : vector<8x128xf32> to vector<1x1x8x128xf32>
    tpu.vector_store %arg9[%c0_62, %c0_63, %c0_64, %c0_65], %113 {strides = array<i32>} : memref<1x1x8x128xf32, #tpu.memory_space<vmem>>, vector<1x1x8x128xf32>,
    %cst_66 = arith.constant dense<0.000000e+00> : vector<128xf32>
    %114 = vector.multi_reduction <add>, %106, %cst_66 [0] : vector<8x128xf32> to vector<128xf32>
    %115 = vector.shape_cast %114 : vector<128xf32> to vector<1x128xf32>
    %c0_67 = arith.constant 0 : index
    %c0_68 = arith.constant 0 : index
    %c0_69 = arith.constant 0 : index
    %c0_70 = arith.constant 0 : index
    %116 = vector.load %arg9[%c0_67, %c0_68, %c0_69, %c0_70] : memref<1x1x8x128xf32, #tpu.memory_space<vmem>>, vector<1x1x1x128xf32>
    %117 = vector.shape_cast %116 : vector<1x1x1x128xf32> to vector<1x128xf32>
    %118 = vector.shape_cast %115 : vector<1x128xf32> to vector<1x1x1x128xf32>
    tpu.vector_store %arg9[%c0_67, %c0_68, %c0_69, %c0_70], %118 {strides = array<i32>} : memref<1x1x8x128xf32, #tpu.memory_space<vmem>>, vector<1x1x1x128xf32>,
    %119 = arith.mulf %106, %106 : vector<8x128xf32>
    %cst_71 = arith.constant dense<0.000000e+00> : vector<128xf32>
    %120 = vector.multi_reduction <add>, %119, %cst_71 [0] : vector<8x128xf32> to vector<128xf32>
    %121 = vector.shape_cast %120 : vector<128xf32> to vector<1x128xf32>
    %c0_72 = arith.constant 0 : index
    %c0_73 = arith.constant 0 : index
    %c1_74 = arith.constant 1 : index
    %c0_75 = arith.constant 0 : index
    %122 = vector.load %arg9[%c0_72, %c0_73, %c1_74, %c0_75] : memref<1x1x8x128xf32, #tpu.memory_space<vmem>>, vector<1x1x1x128xf32>
    %123 = vector.shape_cast %122 : vector<1x1x1x128xf32> to vector<1x128xf32>
    %124 = vector.shape_cast %121 : vector<1x128xf32> to vector<1x1x1x128xf32>
    tpu.vector_store %arg9[%c0_72, %c0_73, %c1_74, %c0_75], %124 {strides = array<i32>} : memref<1x1x8x128xf32, #tpu.memory_space<vmem>>, vector<1x1x1x128xf32>,
    return
  }
  func.func @transform_0(%arg0: i32, %arg1: i32) -> (i32, i32, i32, i32) {
    %c2_i32 = arith.constant 2 : i32
    %0 = arith.muli %c2_i32, %arg1 : i32
    %c0_i32 = arith.constant 0 : i32
    %1 = arith.addi %0, %c0_i32 : i32
    %c1_i32 = arith.constant 1 : i32
    %2 = arith.subi %1, %c1_i32 : i32
    %c0_i32_0 = arith.constant 0 : i32
    %3 = arith.maxsi %2, %c0_i32_0 : i32
    %c0_i32_1 = arith.constant 0 : i32
    %c0_i32_2 = arith.constant 0 : i32
    %c0_i32_3 = arith.constant 0 : i32
    return %arg0, %3, %c0_i32_1, %c0_i32_2 : i32, i32, i32, i32
  }
  func.func @transform_1(%arg0: i32, %arg1: i32) -> (i32, i32, i32, i32) {
    %c2_i32 = arith.constant 2 : i32
    %0 = arith.muli %c2_i32, %arg1 : i32
    %c1_i32 = arith.constant 1 : i32
    %1 = arith.addi %0, %c1_i32 : i32
    %c1_i32_0 = arith.constant 1 : i32
    %2 = arith.subi %1, %c1_i32_0 : i32
    %c0_i32 = arith.constant 0 : i32
    %3 = arith.maxsi %2, %c0_i32 : i32
    %c0_i32_1 = arith.constant 0 : i32
    %c0_i32_2 = arith.constant 0 : i32
    %c0_i32_3 = arith.constant 0 : i32
    return %arg0, %3, %c0_i32_1, %c0_i32_2 : i32, i32, i32, i32
  }
  func.func @transform_2(%arg0: i32, %arg1: i32) -> (i32, i32, i32, i32) {
    %c2_i32 = arith.constant 2 : i32
    %0 = arith.muli %c2_i32, %arg1 : i32
    %c2_i32_0 = arith.constant 2 : i32
    %1 = arith.addi %0, %c2_i32_0 : i32
    %c1_i32 = arith.constant 1 : i32
    %2 = arith.subi %1, %c1_i32 : i32
    %c0_i32 = arith.constant 0 : i32
    %3 = arith.maxsi %2, %c0_i32 : i32
    %c0_i32_1 = arith.constant 0 : i32
    %c0_i32_2 = arith.constant 0 : i32
    %c0_i32_3 = arith.constant 0 : i32
    return %arg0, %3, %c0_i32_1, %c0_i32_2 : i32, i32, i32, i32
  }
  func.func @transform_3(%arg0: i32, %arg1: i32) -> (i32, i32, i32) {
    %c0_i32 = arith.constant 0 : i32
    %c0_i32_0 = arith.constant 0 : i32
    %c0_i32_1 = arith.constant 0 : i32
    %c0_i32_2 = arith.constant 0 : i32
    return %c0_i32, %c0_i32_0, %c0_i32_1 : i32, i32, i32
  }
  func.func @transform_4(%arg0: i32, %arg1: i32) -> (i32, i32) {
    %c0_i32 = arith.constant 0 : i32
    %c0_i32_0 = arith.constant 0 : i32
    %c0_i32_1 = arith.constant 0 : i32
    return %c0_i32, %c0_i32_0 : i32, i32
  }
  func.func @transform_5(%arg0: i32, %arg1: i32) -> (i32, i32) {
    %c0_i32 = arith.constant 0 : i32
    %c0_i32_0 = arith.constant 0 : i32
    %c0_i32_1 = arith.constant 0 : i32
    return %c0_i32, %c0_i32_0 : i32, i32
  }
  func.func @transform_6(%arg0: i32, %arg1: i32) -> (i32, i32, i32, i32) {
    %c0_i32 = arith.constant 0 : i32
    %c0_i32_0 = arith.constant 0 : i32
    %c0_i32_1 = arith.constant 0 : i32
    return %arg0, %arg1, %c0_i32, %c0_i32_0 : i32, i32, i32, i32
  }
  func.func @transform_7(%arg0: i32, %arg1: i32) -> (i32, i32, i32, i32) {
    %c0_i32 = arith.constant 0 : i32
    %c0_i32_0 = arith.constant 0 : i32
    %c0_i32_1 = arith.constant 0 : i32
    return %arg0, %arg1, %c0_i32, %c0_i32_0 : i32, i32, i32, i32
  }
}

module attributes {stable_mosaic.version = 11 : i64} {
  func.func @_bn_relu_kernel(%arg0: i32, %arg1: memref<64x128xf32, #tpu.memory_space<vmem>>, %arg2: memref<1x128xf32, #tpu.memory_space<vmem>>, %arg3: memref<1x128xf32, #tpu.memory_space<vmem>>, %arg4: memref<64x128xf32, #tpu.memory_space<vmem>>) attributes {dimension_semantics = [#tpu.dimension_semantics<parallel>], iteration_bounds = array<i64: 2>, scalar_prefetch = 0 : i64, scratch_operands = 0 : i64, tpu.core_type = #tpu.core_type<tc>, window_params = [{transform_indices = @transform_0, window_bounds = array<i64: 64, 128>}, {pipeline_mode = #tpu.pipeline_mode<synchronous>, transform_indices = @transform_1, window_bounds = array<i64: 1, 128>}, {pipeline_mode = #tpu.pipeline_mode<synchronous>, transform_indices = @transform_2, window_bounds = array<i64: 1, 128>}, {transform_indices = @transform_3, window_bounds = array<i64: 64, 128>}]} {
    %c0 = arith.constant 0 : index
    %c0_0 = arith.constant 0 : index
    %0 = vector.load %arg1[%c0, %c0_0] : memref<64x128xf32, #tpu.memory_space<vmem>>, vector<64x128xf32>
    %c0_1 = arith.constant 0 : index
    %c0_2 = arith.constant 0 : index
    %1 = vector.load %arg2[%c0_1, %c0_2] : memref<1x128xf32, #tpu.memory_space<vmem>>, vector<1x128xf32>
    %2 = vector.broadcast %1 : vector<1x128xf32> to vector<64x128xf32>
    %3 = arith.mulf %0, %2 : vector<64x128xf32>
    %c0_3 = arith.constant 0 : index
    %c0_4 = arith.constant 0 : index
    %4 = vector.load %arg3[%c0_3, %c0_4] : memref<1x128xf32, #tpu.memory_space<vmem>>, vector<1x128xf32>
    %5 = vector.broadcast %4 : vector<1x128xf32> to vector<64x128xf32>
    %6 = arith.addf %3, %5 : vector<64x128xf32>
    %cst = arith.constant 0.000000e+00 : f32
    %7 = vector.broadcast %cst : f32 to vector<64x128xf32>
    %8 = arith.maximumf %6, %7 : vector<64x128xf32>
    %c0_5 = arith.constant 0 : index
    %c0_6 = arith.constant 0 : index
    %9 = vector.load %arg4[%c0_5, %c0_6] : memref<64x128xf32, #tpu.memory_space<vmem>>, vector<64x128xf32>
    tpu.vector_store %arg4[%c0_5, %c0_6], %8 {strides = array<i32>} : memref<64x128xf32, #tpu.memory_space<vmem>>, vector<64x128xf32>,
    return
  }
  func.func @transform_0(%arg0: i32) -> (i32, i32) {
    %c0_i32 = arith.constant 0 : i32
    %c0_i32_0 = arith.constant 0 : i32
    return %arg0, %c0_i32 : i32, i32
  }
  func.func @transform_1(%arg0: i32) -> (i32, i32) {
    %c0_i32 = arith.constant 0 : i32
    %c0_i32_0 = arith.constant 0 : i32
    %c0_i32_1 = arith.constant 0 : i32
    return %c0_i32, %c0_i32_0 : i32, i32
  }
  func.func @transform_2(%arg0: i32) -> (i32, i32) {
    %c0_i32 = arith.constant 0 : i32
    %c0_i32_0 = arith.constant 0 : i32
    %c0_i32_1 = arith.constant 0 : i32
    return %c0_i32, %c0_i32_0 : i32, i32
  }
  func.func @transform_3(%arg0: i32) -> (i32, i32) {
    %c0_i32 = arith.constant 0 : i32
    %c0_i32_0 = arith.constant 0 : i32
    return %arg0, %c0_i32 : i32, i32
  }
}

</mosaic_0001>

<bundles_post_ra>
// kernel: transition_block_forward.5
= control target key start
LH: loop header
LB: loop body
LE: loop exit
PB: predicated region body
PF: predicated region fallthrough
CT: control target
= control target key end

     0   :  { %s327_s12 = smov 0   ;;  %s350_s0 = inlined_call_operand.vmem [shape: f32[128,128], index: 0, kind: input, shape index: {}]   ;;  %s351_s1 = inlined_call_operand.vmem [shape: f32[1,128], index: 1, kind: input, shape index: {}]   ;;  %s352_s2 = inlined_call_operand.vmem [shape: f32[1,128], index: 2, kind: input, shape index: {}]   ;;  %s353_s3 = inlined_call_operand.vmem [shape: f32[128,128], index: 3, kind: output, shape index: {}]  }
   0x1 LB: > { %s278_s13 = sadd.s32 4294967295, %s305_s12   ;;  %p282_p0 = scmp.ge.s32.totalorder %s305_s12, 1  ;;  %s305_s12 = sphi %s327_s12, %s13_s12  }
   0x2   : > { %p138_p1 = scmp.lt.s32.totalorder %s305_s12, 3 }
   0x4   : > { %p139_p2 = pnand %p282_p0, %p138_p1 }
   0x5   : > { %s283_s14 = sshll.u32 (!%p139_p2), %s278_s13, 3 }
   0x6   : > { %142 = sbr.rel (%p139_p2) target bundleno = 29 (0x1d), region = 32  ;;  %p163_p3 = scmp.lt.s32.totalorder (!%p139_p2), %s283_s14, 15 }
   0xb   : > { %s355_s14 = smov (!%p163_p3, %s283_s14), 15  ;;  %v297_v0 = vld [vmem:[%s351_s1] ss:$0 sm:$0xff] }
   0xc   : > { %s284_s17 = sshll.u32 %s355_s14, 3  ;;  %v298_v1 = vld [vmem:[%s352_s2] ss:$0 sm:$0xff] }
   0xd   : > { %s166_s20 = scalar_lea.vmem %s350_s0, %s284_s17  ;;  %s172_s25 = scalar_lea.vmem %s353_s3, %s284_s17 }
   0xe   : > { %v174_v2 = vld [vmem:[%s166_s20] sm:$0xff]  ;;  %v175_v3 = vld [vmem:[%s166_s20 + $0x8] sm:$0xff]  ;;  %v176_v4 = vld [vmem:[%s166_s20 + $0x10] sm:$0xff] }
   0xf   : > { %v186_v5 = vmul.f32 %v297_v0, %v174_v2  ;;  %v187_v6 = vmul.f32 %v297_v0, %v175_v3  ;;  %v188_v7 = vmul.f32 %v297_v0, %v176_v4  ;;  %v177_v8 = vld [vmem:[%s166_s20 + $0x18] sm:$0xff]  ;;  %v178_v9 = vld [vmem:[%s166_s20 + $0x20] sm:$0xff]  ;;  %v179_v10 = vld [vmem:[%s166_s20 + $0x28] sm:$0xff] }
  0x10   : > { %v189_v11 = vmul.f32 %v297_v0, %v177_v8  ;;  %v190_v12 = vmul.f32 %v297_v0, %v178_v9  ;;  %v191_v13 = vmul.f32 %v297_v0, %v179_v10  ;;  %v180_v14 = vld [vmem:[%s166_s20 + $0x30] sm:$0xff]  ;;  %v181_v15 = vld [vmem:[%s166_s20 + $0x38] sm:$0xff] }
  0x11   : > { %v198_v16 = vadd.f32 %v298_v1, %v186_v5  ;;  %v199_v17 = vadd.f32 %v298_v1, %v187_v6  ;;  %v200_v18 = vadd.f32 %v298_v1, %v188_v7  ;;  %v192_v19 = vmul.f32 %v297_v0, %v180_v14 }
  0x12   : > { %v201_v20 = vadd.f32 %v298_v1, %v189_v11  ;;  %v202_v21 = vadd.f32 %v298_v1, %v190_v12  ;;  %v203_v22 = vadd.f32 %v298_v1, %v191_v13  ;;  %v193_v23 = vmul.f32 %v297_v0, %v181_v15 }
  0x13   : > { %v206_v24 = vmax.f32 %v198_v16, 0.0  ;;  %v207_v25 = vmax.f32 %v199_v17, 0.0  ;;  %v208_v26 = vmax.f32 %v200_v18, 0.0  ;;  %v204_v27 = vadd.f32 %v298_v1, %v192_v19 }
  0x14   : > { %v209_v28 = vmax.f32 %v201_v20, 0.0  ;;  %v205_v29 = vadd.f32 %v298_v1, %v193_v23  ;;  %v210_v30 = vmax.f32 %v202_v21, 0.0  ;;  %v211_v31 = vmax.f32 %v203_v22, 0.0 }
  0x15   : > { %214 = vst [vmem:[%s172_s25] sm:$0xff] %v206_v24  ;;  %v212_v32 = vmax.f32 %v204_v27, 0.0 }
  0x16   : > { %215 = vst [vmem:[%s172_s25 + $0x8] sm:$0xff] %v207_v25  ;;  %v213_v33 = vmax.f32 %v205_v29, 0.0 }
  0x17   : > { %216 = vst [vmem:[%s172_s25 + $0x10] sm:$0xff] %v208_v26 }
  0x18   : > { %217 = vst [vmem:[%s172_s25 + $0x18] sm:$0xff] %v209_v28 }
  0x19   : > { %218 = vst [vmem:[%s172_s25 + $0x20] sm:$0xff] %v210_v30 }
  0x1a   : > { %219 = vst [vmem:[%s172_s25 + $0x28] sm:$0xff] %v211_v31 }
  0x1b   : > { %220 = vst [vmem:[%s172_s25 + $0x30] sm:$0xff] %v212_v32 }
  0x1c   : > { %221 = vst [vmem:[%s172_s25 + $0x38] sm:$0xff] %v213_v33 }
  0x1d PF: > { %s13_s12 = sadd.s32 1, %s305_s12  }
  0x1e   : > { %p10_p4 = scmp.ge.s32.totalorder %s13_s12, 4  }
  0x20   :  { %12 = sbr.rel (!%p10_p4) target bundleno = 1 (0x1), region = 62 }

// kernel: transition_block_forward.3
= control target key start
LH: loop header
LB: loop body
LE: loop exit
PB: predicated region body
PF: predicated region fallthrough
CT: control target
= control target key end

     0   :  { %s818_s12 = smov 0   ;;  %s1031_s0 = inlined_call_operand.vmem [shape: bf16[512,4], index: 0, kind: input, shape index: {}]   ;;  %s1032_s1 = inlined_call_operand.vmem [shape: bf16[4,128], index: 1, kind: input, shape index: {}]   ;;  %s1033_s2 = inlined_call_operand.vmem [shape: f32[512,128], index: 2, kind: output, shape index: {0}]   ;;  %s1034_s3 = inlined_call_operand.vmem [shape: f32[2,8,128], index: 3, kind: output, shape index: {1}]  }
   0x1 LB: > { %s824_s13 = sadd.s32 4294967295, %s795_s12   ;;  %p673_p0 = scmp.ge.s32.totalorder %s795_s12, 1  ;;  %s795_s12 = sphi %s818_s12, %s14_s12  }
   0x2   : > { %p141_p1 = scmp.lt.s32.totalorder %s795_s12, 3 }
   0x4   : > { %p142_p2 = pnand %p673_p0, %p141_p1 }
   0x5   : > { %s674_s16 = sshll.u32 (!%p142_p2), %s824_s13, 5  ;;  %p181_p4 = scmp.lt.s32.totalorder (!%p142_p2), %s824_s13, 1 }
   0x6   : > { %145 = sbr.rel (%p142_p2) target bundleno = 263 (0x107), region = 28  ;;  %p170_p3 = scmp.lt.s32.totalorder (!%p142_p2), %s674_s16, 63 }
   0xb   : > { %v218_v0 = vld [vmem:[%s1032_s1] sm:$0x3]  ;;  %vm348_vm0 = vcmask 1041408   ;;  %s1036_s16 = smov (!%p170_p3, %s674_s16), 63  ;;  %vm299_vm1 = vcmask 31744   ;;  %s1038_s13 = smov (!%p181_p4, %s824_s13), 1 }
   0xc   : > { %v350_v1 = vsel %vm348_vm0, %v218_v0, 0  ;;  %s675_s17 = sshll.u32 %s1036_s16, 2  ;;  %s677_s21 = sshll.u32 %s1036_s16, 3 }
   0xd   : > { %359 = vmatpush.bf16.msra.mxu0 %v350_v1  ;;  %777 = vmatpush.bf16.msra.mxu1 %v350_v1  ;;  %s173_s20 = scalar_lea.vmem %s1031_s0, %s675_s17  ;;  %s858_s24 = scalar_lea.vmem %s1033_s2, %s677_s21 }
   0xe   : > { %778 = vmatpush.bf16.msra.mxu2 %v350_v1  ;;  %779 = vmatpush.bf16.msra.mxu3 %v350_v1  ;;  %v761_v2 = vld [vmem:[%s173_s20] sm:$0xff]  ;;  %v762_v6 = vld [vmem:[%s173_s20 + $0x8] sm:$0xff]  ;;  %v763_v10 = vld [vmem:[%s173_s20 + $0x10] sm:$0xff]  ;;  %s678_s25 = sshll.u32 %s1038_s13, 3 }
   0xf   : > { %v765_v3 = vld [vmem:[%s173_s20 + $0x20] sm:$0xff]  ;;  %v766_v7 = vld [vmem:[%s173_s20 + $0x28] sm:$0xff]  ;;  %v767_v11 = vld [vmem:[%s173_s20 + $0x30] sm:$0xff]  ;;  %s978_s28 = scalar_lea.vmem %s1034_s3, %s678_s25 }
  0x10   : > { %v769_v4 = vld [vmem:[%s173_s20 + $0x40] sm:$0xff]  ;;  %743 = vmatmul.msk.bf16.vlgmr.msra.gmra.mxu0 %vm299_vm1, %v761_v2  ;;  %747 = vmatmul.msk.bf16.vlgmr.msra.gmra.mxu1 %vm299_vm1, %v765_v3  ;;  %v770_v8 = vld [vmem:[%s173_s20 + $0x48] sm:$0xff]  ;;  %v771_v12 = vld [vmem:[%s173_s20 + $0x50] sm:$0xff] }
  0x11   : > { %v773_v5 = vld [vmem:[%s173_s20 + $0x60] sm:$0xff]  ;;  %751 = vmatmul.msk.bf16.vlgmr.msra.gmra.mxu2 %vm299_vm1, %v769_v4  ;;  %v774_v9 = vld [vmem:[%s173_s20 + $0x68] sm:$0xff]  ;;  %v775_v13 = vld [vmem:[%s173_s20 + $0x70] sm:$0xff] }
  0x12   : > { %755 = vmatmul.msk.bf16.vlgmr.msra.gmra.mxu3 %vm299_vm1, %v773_v5  ;;  %v764_v14 = vld [vmem:[%s173_s20 + $0x18] sm:$0xff] }
  0x13   : > { %v768_v15 = vld [vmem:[%s173_s20 + $0x38] sm:$0xff] }
  0x14   : > { %v772_v16 = vld [vmem:[%s173_s20 + $0x58] sm:$0xff] }
  0x15   : > { %v776_v17 = vld [vmem:[%s173_s20 + $0x78] sm:$0xff] }
  0x20   : > { %744 = vmatmul.msk.bf16.gmra.mxu0 %vm299_vm1, %v762_v6  ;;  %748 = vmatmul.msk.bf16.gmra.mxu1 %vm299_vm1, %v766_v7 }
  0x21   : > { %752 = vmatmul.msk.bf16.gmra.mxu2 %vm299_vm1, %v770_v8 }
  0x22   : > { %756 = vmatmul.msk.bf16.gmra.mxu3 %vm299_vm1, %v774_v9 }
  0x30   : > { %745 = vmatmul.msk.bf16.gmra.mxu0 %vm299_vm1, %v763_v10  ;;  %749 = vmatmul.msk.bf16.gmra.mxu1 %vm299_vm1, %v767_v11 }
  0x31   : > { %753 = vmatmul.msk.bf16.gmra.mxu2 %vm299_vm1, %v771_v12 }
  0x32   : > { %757 = vmatmul.msk.bf16.gmra.mxu3 %vm299_vm1, %v775_v13 }
  0x40   : > { %746 = vmatmul.msk.bf16.gmra.mxu0 %vm299_vm1, %v764_v14  ;;  %750 = vmatmul.msk.bf16.gmra.mxu1 %vm299_vm1, %v768_v15 }
  0x41   : > { %754 = vmatmul.msk.bf16.gmra.mxu2 %vm299_vm1, %v772_v16 }
  0x42   : > { %758 = vmatmul.msk.bf16.gmra.mxu3 %vm299_vm1, %v776_v17 }
  0x8d   : > { %v361_v18 = vpop.f32.mrf.mxu0  ;;  %v860_v19 = vpop.f32.mrf.mxu1 }
  0x8e   : > { %441 = vst [vmem:[%s858_s24] sm:$0xff] %v361_v18  ;;  %v512_v41 = vmul.f32 %v361_v18, %v361_v18  ;;  %v520_v5 = vmul.f32 %v860_v19, %v860_v19 }
  0x8f   : > { %449 = vst [vmem:[%s858_s24 + $0x40] sm:$0xff] %v860_v19 }
  0x94   : > { %v865_v20 = vpop.f32.mrf.mxu2 }
  0x95   : > { %v363_v21 = vpop.f32.mrf.mxu0  ;;  %v867_v22 = vpop.f32.mrf.mxu1  ;;  %457 = vst [vmem:[%s858_s24 + $0x80] sm:$0xff] %v865_v20 }
  0x96   : > { %442 = vst [vmem:[%s858_s24 + $0x8] sm:$0xff] %v363_v21  ;;  %v872_v23 = vpop.f32.mrf.mxu3  ;;  %v513_v40 = vmul.f32 %v363_v21, %v363_v21  ;;  %v474_v42 = vadd.f32 %v363_v21, %v361_v18  ;;  %v521_v8 = vmul.f32 %v867_v22, %v867_v22 }
  0x97   : > { %450 = vst [vmem:[%s858_s24 + $0x48] sm:$0xff] %v867_v22 }
  0x98   : > { %465 = vst [vmem:[%s858_s24 + $0xc0] sm:$0xff] %v872_v23  ;;  %v544_v44 = vadd.f32 %v513_v40, %v512_v41 }
  0x9c   : > { %v878_v24 = vpop.f32.mrf.mxu2 }
  0x9d   : > { %v366_v25 = vpop.f32.mrf.mxu0  ;;  %v880_v26 = vpop.f32.mrf.mxu1  ;;  %458 = vst [vmem:[%s858_s24 + $0x88] sm:$0xff] %v878_v24 }
  0x9e   : > { %443 = vst [vmem:[%s858_s24 + $0x10] sm:$0xff] %v366_v25  ;;  %v885_v27 = vpop.f32.mrf.mxu3  ;;  %v514_v43 = vmul.f32 %v366_v25, %v366_v25  ;;  %v475_v45 = vadd.f32 %v474_v42, %v366_v25  ;;  %v522_v11 = vmul.f32 %v880_v26, %v880_v26  ;;  %v797_v42 = vmov 0.0  }
  0x9f   : > { %451 = vst [vmem:[%s858_s24 + $0x50] sm:$0xff] %v880_v26 }
  0xa0   : > { %466 = vst [vmem:[%s858_s24 + $0xc8] sm:$0xff] %v885_v27  ;;  %v545_v50 = vadd.f32 %v544_v44, %v514_v43  ;;  %v528_v43 = vmul.f32 %v865_v20, %v865_v20 }
  0xa1   : > { %473 = vst [vmem:[%s978_s28] sm:$0xff] %v797_v42 }
  0xa4   : > { %v891_v28 = vpop.f32.mrf.mxu2 }
  0xa5   : > { %v368_v29 = vpop.f32.mrf.mxu0  ;;  %v893_v30 = vpop.f32.mrf.mxu1  ;;  %459 = vst [vmem:[%s858_s24 + $0x90] sm:$0xff] %v891_v28 }
  0xa6   : > { %444 = vst [vmem:[%s858_s24 + $0x18] sm:$0xff] %v368_v29  ;;  %v898_v31 = vpop.f32.mrf.mxu3  ;;  %v515_v46 = vmul.f32 %v368_v29, %v368_v29  ;;  %v476_v51 = vadd.f32 %v475_v45, %v368_v29  ;;  %v523_v15 = vmul.f32 %v893_v30, %v893_v30  ;;  %v529_v45 = vmul.f32 %v878_v24, %v878_v24 }
  0xa7   : > { %452 = vst [vmem:[%s858_s24 + $0x58] sm:$0xff] %v893_v30 }
  0xa8   : > { %467 = vst [vmem:[%s858_s24 + $0xd0] sm:$0xff] %v898_v31  ;;  %v546_v54 = vadd.f32 %v545_v50, %v515_v46 }
  0xac   : > { %v904_v32 = vpop.f32.mrf.mxu2 }
  0xad   : > { %v371_v33 = vpop.f32.mrf.mxu0  ;;  %v906_v34 = vpop.f32.mrf.mxu1  ;;  %460 = vst [vmem:[%s858_s24 + $0x98] sm:$0xff] %v904_v32 }
  0xae   : > { %445 = vst [vmem:[%s858_s24 + $0x20] sm:$0xff] %v371_v33  ;;  %v911_v35 = vpop.f32.mrf.mxu3  ;;  %v516_v52 = vmul.f32 %v371_v33, %v371_v33  ;;  %v477_v55 = vadd.f32 %v476_v51, %v371_v33 }
  0xaf   : > { %453 = vst [vmem:[%s858_s24 + $0x60] sm:$0xff] %v906_v34 }
  0xb0   : > { %468 = vst [vmem:[%s858_s24 + $0xd8] sm:$0xff] %v911_v35  ;;  %v547_v57 = vadd.f32 %v546_v54, %v516_v52  ;;  %v531_v52 = vmul.f32 %v904_v32, %v904_v32 }
  0xb4   : > { %v917_v36 = vpop.f32.mrf.mxu2 }
  0xb5   : > { %v373_v37 = vpop.f32.mrf.mxu0  ;;  %v919_v38 = vpop.f32.mrf.mxu1  ;;  %461 = vst [vmem:[%s858_s24 + $0xa0] sm:$0xff] %v917_v36 }
  0xb6   : > { %446 = vst [vmem:[%s858_s24 + $0x28] sm:$0xff] %v373_v37  ;;  %v924_v39 = vpop.f32.mrf.mxu3  ;;  %v517_v56 = vmul.f32 %v373_v37, %v373_v37  ;;  %v478_v58 = vadd.f32 %v477_v55, %v373_v37  ;;  %v525_v25 = vmul.f32 %v919_v38, %v919_v38 }
  0xb7   : > { %454 = vst [vmem:[%s858_s24 + $0x68] sm:$0xff] %v919_v38 }
  0xb8   : > { %469 = vst [vmem:[%s858_s24 + $0xe0] sm:$0xff] %v924_v39  ;;  %v548_v60 = vadd.f32 %v547_v57, %v517_v56 }
  0xbc   : > { %v930_v47 = vpop.f32.mrf.mxu2 }
  0xbd   : > { %v376_v48 = vpop.f32.mrf.mxu0  ;;  %v396_v49 = vpop.f32.mrf.mxu1  ;;  %462 = vst [vmem:[%s858_s24 + $0xa8] sm:$0xff] %v930_v47 }
  0xbe   : > { %447 = vst [vmem:[%s858_s24 + $0x30] sm:$0xff] %v376_v48  ;;  %v935_v53 = vpop.f32.mrf.mxu3  ;;  %v518_v59 = vmul.f32 %v376_v48, %v376_v48  ;;  %v479_v61 = vadd.f32 %v478_v58, %v376_v48  ;;  %v526_v37 = vmul.f32 %v396_v49, %v396_v49  ;;  %v533_v58 = vmul.f32 %v930_v47, %v930_v47 }
  0xbf   : > { %455 = vst [vmem:[%s858_s24 + $0x70] sm:$0xff] %v396_v49 }
  0xc0   : > { %470 = vst [vmem:[%s858_s24 + $0xe8] sm:$0xff] %v935_v53  ;;  %v549_v1 = vadd.f32 %v548_v60, %v518_v59 }
  0xc4   : > { %v940_v62 = vpop.f32.mrf.mxu2 }
  0xc5   : > { %v378_v63 = vpop.f32.mrf.mxu0  ;;  %v398_v0 = vpop.f32.mrf.mxu1  ;;  %463 = vst [vmem:[%s858_s24 + $0xb0] sm:$0xff] %v940_v62 }
  0xc6   : > { %448 = vst [vmem:[%s858_s24 + $0x38] sm:$0xff] %v378_v63  ;;  %v480_v2 = vadd.f32 %v479_v61, %v378_v63  ;;  %v519_v3 = vmul.f32 %v378_v63, %v378_v63  ;;  %v945_v4 = vpop.f32.mrf.mxu3  ;;  %v534_v61 = vmul.f32 %v940_v62, %v940_v62 }
  0xc7   : > { %456 = vst [vmem:[%s858_s24 + $0x78] sm:$0xff] %v398_v0 }
  0xc8   : > { %v481_v6 = vadd.f32 %v480_v2, %v860_v19  ;;  %v550_v7 = vadd.f32 %v549_v1, %v519_v3  ;;  %471 = vst [vmem:[%s858_s24 + $0xf0] sm:$0xff] %v945_v4  ;;  %v524_v19 = vmul.f32 %v906_v34, %v906_v34  ;;  %v536_v1 = vmul.f32 %v872_v23, %v872_v23 }
  0xc9   : > { %v537_v3 = vmul.f32 %v885_v27, %v885_v27 }
  0xca   : > { %v482_v9 = vadd.f32 %v481_v6, %v867_v22  ;;  %v551_v10 = vadd.f32 %v550_v7, %v520_v5  ;;  %v538_v6 = vmul.f32 %v898_v31, %v898_v31 }
  0xcc   : > { %v483_v12 = vadd.f32 %v482_v9, %v880_v26  ;;  %v552_v13 = vadd.f32 %v551_v10, %v521_v8  ;;  %v418_v14 = vpop.f32.mrf.mxu2  ;;  %v539_v8 = vmul.f32 %v911_v35, %v911_v35 }
  0xcd   : > { %464 = vst [vmem:[%s858_s24 + $0xb8] sm:$0xff] %v418_v14 }
  0xce   : > { %v553_v16 = vadd.f32 %v552_v13, %v522_v11  ;;  %v484_v17 = vadd.f32 %v483_v12, %v893_v30  ;;  %v965_v18 = vpop.f32.mrf.mxu3  ;;  %v541_v13 = vmul.f32 %v935_v53, %v935_v53 }
  0xcf   : > { %472 = vst [vmem:[%s858_s24 + $0xf8] sm:$0xff] %v965_v18 }
  0xd0   : > { %v485_v21 = vadd.f32 %v484_v17, %v906_v34  ;;  %v554_v22 = vadd.f32 %v553_v16, %v523_v15  ;;  %v527_v34 = vmul.f32 %v398_v0, %v398_v0  ;;  %v542_v16 = vmul.f32 %v945_v4, %v945_v4 }
  0xd2   : > { %v486_v26 = vadd.f32 %v485_v21, %v919_v38  ;;  %v555_v29 = vadd.f32 %v554_v22, %v524_v19 }
  0xd4   : > { %v487_v33 = vadd.f32 %v486_v26, %v396_v49  ;;  %v556_v30 = vadd.f32 %v555_v29, %v525_v25  ;;  %v530_v49 = vmul.f32 %v891_v28, %v891_v28 }
  0xd6   : > { %v557_v40 = vadd.f32 %v556_v30, %v526_v37  ;;  %v488_v41 = vadd.f32 %v487_v33, %v398_v0  ;;  %v535_v0 = vmul.f32 %v418_v14, %v418_v14 }
  0xd8   : > { %v489_v38 = vadd.f32 %v488_v41, %v865_v20  ;;  %v558_v44 = vadd.f32 %v557_v40, %v527_v34  ;;  %v532_v20 = vmul.f32 %v917_v36, %v917_v36 }
  0xda   : > { %v490_v46 = vadd.f32 %v489_v38, %v878_v24  ;;  %v559_v48 = vadd.f32 %v558_v44, %v528_v43 }
  0xdc   : > { %v491_v50 = vadd.f32 %v490_v46, %v891_v28  ;;  %v560_v51 = vadd.f32 %v559_v48, %v529_v45 }
  0xde   : > { %v561_v54 = vadd.f32 %v560_v51, %v530_v49  ;;  %v492_v55 = vadd.f32 %v491_v50, %v904_v32 }
  0xe0   : > { %v493_v56 = vadd.f32 %v492_v55, %v917_v36  ;;  %v562_v57 = vadd.f32 %v561_v54, %v531_v52 }
  0xe2   : > { %v494_v24 = vadd.f32 %v493_v56, %v930_v47  ;;  %v563_v59 = vadd.f32 %v562_v57, %v532_v20 }
  0xe4   : > { %v564_v28 = vadd.f32 %v563_v59, %v533_v58  ;;  %v495_v60 = vadd.f32 %v494_v24, %v940_v62 }
  0xe6   : > { %v565_v63 = vadd.f32 %v564_v28, %v534_v61  ;;  %v496_v32 = vadd.f32 %v495_v60, %v418_v14 }
  0xe8   : > { %v497_v36 = vadd.f32 %v496_v32, %v872_v23  ;;  %v566_v2 = vadd.f32 %v565_v63, %v535_v0  ;;  %v540_v23 = vmul.f32 %v924_v39, %v924_v39 }
  0xea   : > { %v498_v47 = vadd.f32 %v497_v36, %v885_v27  ;;  %v567_v5 = vadd.f32 %v566_v2, %v536_v1 }
  0xec   : > { %v499_v62 = vadd.f32 %v498_v47, %v898_v31  ;;  %v568_v7 = vadd.f32 %v567_v5, %v537_v3 }
  0xee   : > { %v569_v9 = vadd.f32 %v568_v7, %v538_v6  ;;  %v500_v10 = vadd.f32 %v499_v62, %v911_v35 }
  0xf0   : > { %v501_v11 = vadd.f32 %v500_v10, %v924_v39  ;;  %v570_v12 = vadd.f32 %v569_v9, %v539_v8  ;;  %v543_v39 = vmul.f32 %v965_v18, %v965_v18 }
  0xf2   : > { %v502_v27 = vadd.f32 %v501_v11, %v935_v53  ;;  %v571_v14 = vadd.f32 %v570_v12, %v540_v23 }
  0xf4   : > { %v572_v31 = vadd.f32 %v571_v14, %v541_v13  ;;  %v503_v15 = vadd.f32 %v502_v27, %v945_v4 }
  0xf6   : > { %v573_v35 = vadd.f32 %v572_v31, %v542_v16  ;;  %v504_v17 = vadd.f32 %v503_v15, %v965_v18 }
  0xf8   : > { %v505_v19 = vrot.slane %v504_v17, 4  ;;  %v574_v21 = vadd.f32 %v573_v35, %v543_v39 }
  0xfa   : > { %v506_v22 = vadd.f32 %v505_v19, %v504_v17  ;;  %v575_v25 = vrot.slane %v574_v21, 4 }
  0xfc   : > { %v507_v53 = vrot.slane %v506_v22, 2  ;;  %v576_v26 = vadd.f32 %v575_v25, %v574_v21 }
  0xfe   : > { %v508_v29 = vadd.f32 %v507_v53, %v506_v22  ;;  %v577_v33 = vrot.slane %v576_v26, 2 }
 0x100   : > { %v509_v37 = vrot.slane %v508_v29, 1  ;;  %v578_v30 = vadd.f32 %v577_v33, %v576_v26 }
 0x102   : > { %v510_v40 = vadd.f32 %v509_v37, %v508_v29  ;;  %v579_v4 = vrot.slane %v578_v30, 1 }
 0x104   : > { %511 = vst [vmem:[%s978_s28] sm:$0x1] %v510_v40  ;;  %v580_v41 = vadd.f32 %v579_v4, %v578_v30 }
 0x106   : > { %581 = vst [vmem:[%s978_s28 + $0x1] sm:$0x1] %v580_v41 }
 0x107 PF: > { %s14_s12 = sadd.s32 1, %s795_s12  }
 0x108   : > { %p11_p5 = scmp.ge.s32.totalorder %s14_s12, 4  }
 0x10a   :  { %13 = sbr.rel (!%p11_p5) target bundleno = 1 (0x1), region = 70 }

// kernel: transition_block_forward.4
= control target key start
LH: loop header
LB: loop body
LE: loop exit
PB: predicated region body
PF: predicated region fallthrough
CT: control target
= control target key end

     0   :  { %s2077_s24 = smov 0   ;;  %s2079_s25 = smov 0   ;;  %s2444_s0 = inlined_call_operand.vmem [shape: f32[2,16,16,128], index: 0, kind: input, shape index: {}, may-alias: {0,1,2}]   ;;  %s2445_s1 = inlined_call_operand.vmem [shape: f32[2,16,16,128], index: 1, kind: input, shape index: {}, may-alias: {0,1,2}]   ;;  %s2446_s2 = inlined_call_operand.vmem [shape: f32[2,16,16,128], index: 2, kind: input, shape index: {}, may-alias: {0,1,2}]   ;;  %s2447_s3 = inlined_call_operand.vmem [shape: bf16[3,384,128], index: 3, kind: input, shape index: {}]   ;;  %s2448_s4 = inlined_call_operand.vmem [shape: f32[1,128], index: 4, kind: input, shape index: {}]   ;;  %s2449_s5 = inlined_call_operand.vmem [shape: f32[1,128], index: 5, kind: input, shape index: {}]   ;;  %s2450_s6 = inlined_call_operand.vmem [shape: f32[2,8,8,128], index: 6, kind: output, shape index: {0}]   ;;  %s2451_s7 = inlined_call_operand.vmem [shape: f32[2,8,8,128], index: 7, kind: output, shape index: {1}]  }
   0x1   :  { %s2081_s26 = smov 0   ;;  %s2083_s27 = smov 0  }
   0x2   :  { %s2085_s28 = smov 0  }
   0x3 LB: > { %s27_s29 = sadd.s32 1, %s2026_s26  ;;  %s30_s30 = sadd.s32 1, %s2030_s27  ;;  %s2034_s28 = sphi %s2085_s28, %s18_s28   ;;  %s2030_s27 = sphi %s2083_s27, %s2457_s27   ;;  %s2026_s26 = sphi %s2081_s26, %s2456_s26   ;;  %s2022_s25 = sphi %s2079_s25, %s2455_s25   ;;  %s2018_s24 = sphi %s2077_s24, %s2454_s24  }
   0x4   : > { %p28_p0 = scmp.ge.s32.totalorder %s27_s29, 8  ;;  %p1438_p1 = scmp.ge.s32.totalorder %s2034_s28, 1 }
   0x5   : > { %p338_p2 = scmp.lt.s32.totalorder %s2034_s28, 17 }
   0x6   : > { %s2459_s29 = smov (%p28_p0, %s27_s29), 0  ;;  %s2461_s30 = smov (!%p28_p0, %s30_s30), %s2030_s27 }
   0x7   : > { %p339_p3 = pnand %p1438_p1, %p338_p2  ;;  %p32_p4 = scmp.ge.s32.totalorder %s2461_s30, 2 }
   0x8   : > { %s2116_s12 = sshll.u32 (!%p339_p3), %s2018_s24, 1  ;;  %p418_p5 = scmp.lt.s32.totalorder (!%p339_p3), %s2022_s25, 1 }
   0x9   : > { %s2463_s30 = smov (%p32_p4, %s2461_s30), 0  ;;  %342 = sbr.rel (%p339_p3) target bundleno = 255 (0xff), region = 44 }
   0xa   : > { %p432_p6 = scmp.gt.s32.totalorder (!%p339_p3), %s2116_s12, 0  ;;  %p1449_p7 = scmp.lt.s32.totalorder (!%p339_p3), %s2116_s12, 15 }
   0xb   : > { %s415_s11 = sadd.s32 (!%p339_p3), 4294967295, %s2116_s12  ;;  %p481_p10 = scmp.gt.s32.totalorder (!%p339_p3), %s2018_s24, 0 }
   0xc   : > { %p416_p8 = scmp.gt.s32.totalorder (!%p339_p3), %s415_s11, 0  ;;  %p1440_p9 = scmp.lt.s32.totalorder (!%p339_p3), %s415_s11, 15 }
   0xd   : > { %p465_p13 = scmp.lt.s32.totalorder (!%p339_p3), %s2018_s24, 7 }
   0xe   : > { %v1911_v0 = vld [vmem:[%s2447_s3 + $0xf8] sm:$0xff]  ;;  %v1910_v2 = vld [vmem:[%s2447_s3 + $0xf0] sm:$0xff]  ;;  %s2465_s25 = smov (!%p418_p5, %s2022_s25), 1  ;;  %v1909_v8 = vld [vmem:[%s2447_s3 + $0xe8] sm:$0xff]  ;;  %s2469_s11 = smov (!%p416_p8, %s415_s11), 0  ;;  %v502_v31 = vlaneseq }
   0xf   : > { %v1919_v1 = vld [vmem:[%s2447_s3 + $0x138] sm:$0xff]  ;;  %764 = vmatpush.bf16.msra.mxu0 %v1911_v0  ;;  %v1918_v3 = vld [vmem:[%s2447_s3 + $0x130] sm:$0xff]  ;;  %s433_s21 = scalar_select %p432_p6, %s2116_s12, 0  ;;  %v1917_v9 = vld [vmem:[%s2447_s3 + $0x128] sm:$0xff] }
  0x10   : > { %777 = vmatpush.bf16.msra.mxu1 %v1919_v1  ;;  %v1927_v4 = vld [vmem:[%s2447_s3 + $0x178] sm:$0xff]  ;;  %v1926_v6 = vld [vmem:[%s2447_s3 + $0x170] sm:$0xff]  ;;  %s2142_s10 = sshll.u32 %s2465_s25, 5  ;;  %v1925_v10 = vld [vmem:[%s2447_s3 + $0x168] sm:$0xff]  ;;  %s2471_s11 = smov (!%p1440_p9, %s2469_s11), 15  ;;  %v503_v40 = vshrl.u32 %v502_v31, 7 }
  0x11   : > { %v1887_v5 = vld [vmem:[%s2447_s3 + $0x38] sm:$0xff]  ;;  %790 = vmatpush.bf16.msra.mxu2 %v1927_v4  ;;  %v1886_v7 = vld [vmem:[%s2447_s3 + $0x30] sm:$0xff]  ;;  %s2467_s21 = smov (!%p1449_p7, %s433_s21), 15  ;;  %v1885_v11 = vld [vmem:[%s2447_s3 + $0x28] sm:$0xff]  ;;  %s2475_s24 = smov (!%p465_p13, %s2018_s24), 7 }
  0x12   : > { %947 = vmatpush.bf16.msra.mxu3 %v1887_v5  ;;  %s1454_s17 = sshll.u32 %s2467_s21, 1  ;;  %v1908_v12 = vld [vmem:[%s2447_s3 + $0xe0] sm:$0xff]  ;;  %v1907_v16 = vld [vmem:[%s2447_s3 + $0xd8] sm:$0xff]  ;;  %v1906_v25 = vld [vmem:[%s2447_s3 + $0xd0] sm:$0xff]  ;;  %vm1952_vm0 = vcmp.ne.s32.totalorder %v503_v40, 0 }
  0x13   : > { %765 = vmatpush.bf16.msra.mxu0 %v1910_v2  ;;  %s440_s23 = sadd.s32 %s1454_s17, %s2142_s10  ;;  %v1916_v13 = vld [vmem:[%s2447_s3 + $0x120] sm:$0xff]  ;;  %v1915_v17 = vld [vmem:[%s2447_s3 + $0x118] sm:$0xff]  ;;  %v1914_v26 = vld [vmem:[%s2447_s3 + $0x110] sm:$0xff] }
  0x14   : > { %778 = vmatpush.bf16.msra.mxu1 %v1918_v3  ;;  %s1456_s8 = sshll.u32 %s440_s23, 3  ;;  %v1924_v14 = vld [vmem:[%s2447_s3 + $0x160] sm:$0xff]  ;;  %v1923_v18 = vld [vmem:[%s2447_s3 + $0x158] sm:$0xff]  ;;  %v1922_v29 = vld [vmem:[%s2447_s3 + $0x150] sm:$0xff] }
  0x15   : > { %791 = vmatpush.bf16.msra.mxu2 %v1926_v6  ;;  %v1884_v15 = vld [vmem:[%s2447_s3 + $0x20] sm:$0xff]  ;;  %s442_s22 = scalar_lea.vmem %s2445_s1, %s1456_s8  ;;  %v1883_v19 = vld [vmem:[%s2447_s3 + $0x18] sm:$0xff]  ;;  %s2189_s8 = sadd.s32 1, %s2116_s12  ;;  %v1882_v30 = vld [vmem:[%s2447_s3 + $0x10] sm:$0xff] }
  0x16   : > { %948 = vmatpush.bf16.msra.mxu3 %v1886_v7  ;;  %v2194_v20 = vld [vmem:[%s2448_s4] ss:$0 sm:$0xff]  ;;  %v1471_v22 = vld [vmem:[%s442_s22 + $0x1] ss:$2 sm:$0xff]  ;;  %s2203_s9 = scalar_select %p481_p10, 1.0, 0.0  ;;  %vm2288_vm1 = vmpackc.low %vm1952_vm0, %vm1952_vm0 }
  0x17   : > { %766 = vmatpush.bf16.msra.mxu0 %v1909_v8  ;;  %v2199_v21 = vld [vmem:[%s2449_s5] ss:$0 sm:$0xff]  ;;  %v563_v23 = vmul.f32 %v2194_v20, %v1471_v22  ;;  %s1445_s12 = sshll.u32 %s2471_s11, 1  ;;  %p448_p11 = scmp.gt.s32.totalorder %s2189_s8, 0  ;;  %v1905_v33 = vld [vmem:[%s2447_s3 + $0xc8] sm:$0xff]  ;;  %v1895_v48 = vld [vmem:[%s2447_s3 + $0x78] sm:$0xff] }
  0x18   : > { %779 = vmatpush.bf16.msra.mxu1 %v1917_v9  ;;  %v557_v24 = vld [vmem:[%s442_s22] ss:$2 sm:$0xff]  ;;  %s424_s16 = sadd.s32 %s2142_s10, %s1445_s12  ;;  %p1458_p12 = scmp.lt.s32.totalorder %s2189_s8, 15  ;;  %v495_v42 = vstv %s2203_s9  ;;  %v1903_v49 = vld [vmem:[%s2447_s3 + $0xb8] sm:$0xff]  ;;  %v1894_v58 = vld [vmem:[%s2447_s3 + $0x70] sm:$0xff] }
  0x19   : > { %792 = vmatpush.bf16.msra.mxu2 %v1925_v10  ;;  %v560_v27 = vmul.f32 %v2194_v20, %v557_v24  ;;  %v564_v28 = vadd.f32 %v2199_v21, %v563_v23  ;;  %s1447_s11 = sshll.u32 %s424_s16, 3  ;;  %v1913_v34 = vld [vmem:[%s2447_s3 + $0x108] sm:$0xff]  ;;  %v1904_v43 = vld [vmem:[%s2447_s3 + $0xc0] sm:$0xff]  ;;  %v1935_v53 = vld [vmem:[%s2447_s3 + $0x1b8] sm:$0xff]  ;;  %s1466_s16 = sshll.u32 %s2465_s25, 3 }
  0x1a   : > { %949 = vmatpush.bf16.msra.mxu3 %v1885_v11  ;;  %s2225_s13 = scalar_lea.vmem %s2444_s0, %s1447_s11  ;;  %v1921_v38 = vld [vmem:[%s2447_s3 + $0x148] sm:$0xff]  ;;  %v1912_v44 = vld [vmem:[%s2447_s3 + $0x100] sm:$0xff]  ;;  %v1943_v54 = vld [vmem:[%s2447_s3 + $0x1f8] sm:$0xff] }
  0x1b   : > { %767 = vmatpush.bf16.msra.mxu0 %v1908_v12  ;;  %v1470_v32 = vld [vmem:[%s2225_s13 + $0x1] ss:$2 sm:$0xff]  ;;  %s449_s12 = scalar_select %p448_p11, %s2189_s8, 0  ;;  %v565_v35 = vmax.f32 %v564_v28, 0.0  ;;  %v561_v36 = vadd.f32 %v2199_v21, %v560_v27  ;;  %v1902_v59 = vld [vmem:[%s2447_s3 + $0xb0] sm:$0xff]  ;;  %v1891_v12 = vld [vmem:[%s2447_s3 + $0x58] sm:$0xff] }
  0x1c   : > { %780 = vmatpush.bf16.msra.mxu1 %v1916_v13  ;;  %v497_v37 = vmul.f32 %v2194_v20, %v1470_v32  ;;  %v1881_v39 = vld [vmem:[%s2447_s3 + $0x8] sm:$0xff]  ;;  %v1920_v50 = vld [vmem:[%s2447_s3 + $0x140] sm:$0xff]  ;;  %v1934_v63 = vld [vmem:[%s2447_s3 + $0x1b0] sm:$0xff] }
  0x1d   : > { %793 = vmatpush.bf16.msra.mxu2 %v1924_v14  ;;  %s2473_s12 = smov (!%p1458_p12, %s449_s12), 15  ;;  %v566_v45 = vrot.slane %v565_v35, 7  ;;  %v562_v46 = vmax.f32 %v561_v36, 0.0  ;;  %v1880_v51 = vld [vmem:[%s2447_s3] sm:$0xff]  ;;  %v570_v61 = vpack.c.bf16 %v565_v35, %v565_v35  ;;  %v1942_v0 = vld [vmem:[%s2447_s3 + $0x1f0] sm:$0xff]  ;;  %v1893_v1 = vld [vmem:[%s2447_s3 + $0x68] sm:$0xff] }
  0x1e   : > { %950 = vmatpush.bf16.msra.mxu3 %v1884_v15  ;;  %v498_v41 = vadd.f32 %v2199_v21, %v497_v37  ;;  %s1463_s14 = sshll.u32 %s2473_s12, 1  ;;  %v1901_v2 = vld [vmem:[%s2447_s3 + $0xa8] sm:$0xff]  ;;  %v1892_v5 = vld [vmem:[%s2447_s3 + $0x60] sm:$0xff]  ;;  %v1899_v13 = vld [vmem:[%s2447_s3 + $0x98] sm:$0xff] }
  0x1f   : > { %768 = vmatpush.bf16.msra.mxu0 %v1907_v16  ;;  %v1619_v55 = vpack.c.bf16 %v566_v45, %v566_v45  ;;  %v569_v56 = vpack.c.bf16 %v562_v46, %v562_v46  ;;  %s456_s12 = sadd.s32 %s1463_s14, %s2142_s10  ;;  %v1933_v3 = vld [vmem:[%s2447_s3 + $0x1a8] sm:$0xff]  ;;  %v1900_v6 = vld [vmem:[%s2447_s3 + $0xa0] sm:$0xff]  ;;  %v1931_v15 = vld [vmem:[%s2447_s3 + $0x198] sm:$0xff] }
  0x20   : > { %781 = vmatpush.bf16.msra.mxu1 %v1915_v17  ;;  %v499_v47 = vmax.f32 %v498_v41, 0.0  ;;  %s1465_s14 = sshll.u32 %s456_s12, 3  ;;  %v1941_v4 = vld [vmem:[%s2447_s3 + $0x1e8] sm:$0xff]  ;;  %v1932_v8 = vld [vmem:[%s2447_s3 + $0x1a0] sm:$0xff]  ;;  %v1939_v16 = vld [vmem:[%s2447_s3 + $0x1d8] sm:$0xff] }
  0x21   : > { %794 = vmatpush.bf16.msra.mxu2 %v1923_v18  ;;  %s458_s18 = scalar_lea.vmem %s2446_s2, %s1465_s14  ;;  %v483_v7 = vld [vmem:[%s2225_s13] ss:$2 sm:$0xff]  ;;  %v1898_v22 = vld [vmem:[%s2447_s3 + $0x90] sm:$0xff]  ;;  %v1951_v36 = vld [vmem:[%s2447_s3 + $0x238] sm:$0xff]  ;;  %s468_s13 = sadd.s32 %s1466_s16, %s2475_s24 }
  0x22   : > { %951 = vmatpush.bf16.msra.mxu3 %v1883_v19  ;;  %v2272_v52 = vmul.f32 %v499_v47, %v495_v42  ;;  %v1940_v9 = vld [vmem:[%s2447_s3 + $0x1e0] sm:$0xff]  ;;  %v489_v11 = vmul.f32 %v2194_v20, %v483_v7  ;;  %v1890_v19 = vld [vmem:[%s2447_s3 + $0x50] sm:$0xff]  ;;  %v1889_v28 = vld [vmem:[%s2447_s3 + $0x48] sm:$0xff]  ;;  %s1467_s11 = sshll.u32 %s468_s13, 3 }
  0x23   : > { %769 = vmatpush.bf16.msra.mxu0 %v1906_v25  ;;  %v1722_v10 = vld [vmem:[%s458_s18 + $0x1] ss:$2 sm:$0xff]  ;;  %v986_v18 = vld [vmem:[%s458_s18] ss:$2 sm:$0xff]  ;;  %v1930_v24 = vld [vmem:[%s2447_s3 + $0x190] sm:$0xff]  ;;  %s2421_s12 = scalar_lea.vmem %s2451_s7, %s1467_s11  ;;  %s470_s19 = scalar_lea.vmem %s2450_s6, %s1467_s11 }
  0x24   : > { %782 = vmatpush.bf16.msra.mxu1 %v1914_v26  ;;  %v501_v57 = vrot.slane %v2272_v52, 7  ;;  %v992_v14 = vmul.f32 %v2194_v20, %v1722_v10  ;;  %v493_v17 = vadd.f32 %v2199_v21, %v489_v11  ;;  %v1938_v25 = vld [vmem:[%s2447_s3 + $0x1d0] sm:$0xff]  ;;  %v989_v26 = vmul.f32 %v2194_v20, %v986_v18  ;;  %v1929_v31 = vld [vmem:[%s2447_s3 + $0x188] sm:$0xff]  ;;  %v1896_v35 = vld [vmem:[%s2447_s3 + $0x80] sm:$0xff] }
  0x25   : > { %795 = vmatpush.bf16.msra.mxu2 %v1922_v29  ;;  %v1897_v29 = vld [vmem:[%s2447_s3 + $0x88] sm:$0xff]  ;;  %v508_v41 = vpack.c.bf16 %v2272_v52, %v2272_v52  ;;  %v1948_v46 = vld [vmem:[%s2447_s3 + $0x220] sm:$0xff]  ;;  %v1947_v47 = vld [vmem:[%s2447_s3 + $0x218] sm:$0xff] }
  0x26   : > { %952 = vmatpush.bf16.msra.mxu3 %v1882_v30  ;;  %v1720_v62 = vpack.c.bf16 %v501_v57, %v501_v57  ;;  %v993_v23 = vadd.f32 %v2199_v21, %v992_v14  ;;  %v494_v27 = vmax.f32 %v493_v17, 0.0  ;;  %v1937_v20 = vld [vmem:[%s2447_s3 + $0x1c8] sm:$0xff]  ;;  %v990_v32 = vadd.f32 %v2199_v21, %v989_v26  ;;  %v1928_v21 = vld [vmem:[%s2447_s3 + $0x180] sm:$0xff] }
  0x27   : > { %770 = vmatpush.bf16.msra.mxu0 %v1905_v33  ;;  %v1949_v45 = vld [vmem:[%s2447_s3 + $0x228] sm:$0xff] }
  0x28   : > { %783 = vmatpush.bf16.msra.mxu1 %v1913_v34  ;;  %v994_v30 = vmax.f32 %v993_v23, 0.0  ;;  %v496_v33 = vmul.f32 %v495_v42, %v494_v27  ;;  %v1888_v34 = vld [vmem:[%s2447_s3 + $0x40] sm:$0xff]  ;;  %v1950_v42 = vld [vmem:[%s2447_s3 + $0x230] sm:$0xff] }
  0x29   : > { %796 = vmatpush.bf16.msra.mxu2 %v1921_v38  ;;  %v1936_v38 = vld [vmem:[%s2447_s3 + $0x1c0] sm:$0xff] }
  0x2a   : > { %953 = vmatpush.bf16.msra.mxu3 %v1881_v39  ;;  %v995_v37 = vrot.slane %v994_v30, 7  ;;  %v991_v39 = vmax.f32 %v990_v32, 0.0  ;;  %v507_v40 = vpack.c.bf16 %v496_v33, %v496_v33 }
  0x2b   : > { %771 = vmatpush.bf16.msra.mxu0 %v1904_v43 }
  0x2c   : > { %784 = vmatpush.bf16.msra.mxu1 %v1912_v44  ;;  %v1870_v43 = vpack.c.bf16 %v995_v37, %v995_v37  ;;  %v998_v44 = vpack.c.bf16 %v991_v39, %v991_v39 }
  0x2d   : > { %797 = vmatpush.bf16.msra.mxu2 %v1920_v50  ;;  %v1944_v50 = vld [vmem:[%s2447_s3 + $0x200] sm:$0xff] }
  0x2e   : > { %954 = vmatpush.bf16.msra.mxu3 %v1880_v51  ;;  %1620 = vmatmul.msk.bf16.vlgmr.msra.gmra.mxu0 %vm2288_vm1, %v1619_v55  ;;  %v999_v51 = vpack.c.bf16 %v994_v30, %v994_v30 }
  0x2f   : > { %960 = vmatpush.bf16.msrb.mxu0 %v1895_v48  ;;  %785 = vmatmul.bf16.vlgmr.msra.gmra.mxu1 %v569_v56  ;;  %v1946_v48 = vld [vmem:[%s2447_s3 + $0x210] sm:$0xff] }
  0x30   : > { %973 = vmatpush.bf16.msrb.mxu1 %v1903_v49  ;;  %798 = vmatmul.bf16.vlgmr.msra.gmra.mxu2 %v570_v61  ;;  %v1945_v49 = vld [vmem:[%s2447_s3 + $0x208] sm:$0xff] }
  0x31   : > { %1193 = vmatpush.bf16.msrb.mxu2 %v1935_v53  ;;  %1721 = vmatmul.msk.bf16.vlgmr.msra.gmra.mxu3 %vm2288_vm1, %v1720_v62  ;;  %v2036_v62 = vmov 0.0  }
  0x32   : > { %1206 = vmatpush.bf16.msrb.mxu3 %v1943_v54  ;;  %1234 = vst [vmem:[%s2421_s12] sm:$0xff] %v2036_v62 }
  0x33   : > { %961 = vmatpush.bf16.msrb.mxu0 %v1894_v58 }
  0x34   : > { %974 = vmatpush.bf16.msrb.mxu1 %v1902_v59 }
  0x35   : > { %1194 = vmatpush.bf16.msrb.mxu2 %v1934_v63 }
  0x36   : > { %1207 = vmatpush.bf16.msrb.mxu3 %v1942_v0 }
  0x37   : > { %962 = vmatpush.bf16.msrb.mxu0 %v1893_v1 }
  0x38   : > { %975 = vmatpush.bf16.msrb.mxu1 %v1901_v2 }
  0x39   : > { %1195 = vmatpush.bf16.msrb.mxu2 %v1933_v3 }
  0x3a   : > { %1208 = vmatpush.bf16.msrb.mxu3 %v1941_v4 }
  0x3b   : > { %963 = vmatpush.bf16.msrb.mxu0 %v1892_v5 }
  0x3c   : > { %976 = vmatpush.bf16.msrb.mxu1 %v1900_v6 }
  0x3d   : > { %1196 = vmatpush.bf16.msrb.mxu2 %v1932_v8 }
  0x3e   : > { %1209 = vmatpush.bf16.msrb.mxu3 %v1940_v9 }
  0x3f   : > { %964 = vmatpush.bf16.msrb.mxu0 %v1891_v12 }
  0x40   : > { %977 = vmatpush.bf16.msrb.mxu1 %v1899_v13 }
  0x41   : > { %1197 = vmatpush.bf16.msrb.mxu2 %v1931_v15 }
  0x42   : > { %1210 = vmatpush.bf16.msrb.mxu3 %v1939_v16 }
  0x43   : > { %965 = vmatpush.bf16.msrb.mxu0 %v1890_v19 }
  0x44   : > { %978 = vmatpush.bf16.msrb.mxu1 %v1898_v22 }
  0x45   : > { %1198 = vmatpush.bf16.msrb.mxu2 %v1930_v24 }
  0x46   : > { %1211 = vmatpush.bf16.msrb.mxu3 %v1938_v25 }
  0x47   : > { %966 = vmatpush.bf16.msrb.mxu0 %v1889_v28 }
  0x48   : > { %979 = vmatpush.bf16.msrb.mxu1 %v1897_v29 }
  0x49   : > { %1199 = vmatpush.bf16.msrb.mxu2 %v1929_v31 }
  0x4a   : > { %1212 = vmatpush.bf16.msrb.mxu3 %v1937_v20 }
  0x4b   : > { %967 = vmatpush.bf16.msrb.mxu0 %v1888_v34 }
  0x4c   : > { %980 = vmatpush.bf16.msrb.mxu1 %v1896_v35 }
  0x4d   : > { %1200 = vmatpush.bf16.msrb.mxu2 %v1928_v21 }
  0x4e   : > { %1213 = vmatpush.bf16.msrb.mxu3 %v1936_v38  ;;  %968 = vmatmul.bf16.vlgmr.msrb.gmra.mxu0 %v507_v40 }
  0x4f   : > { %1219 = vmatpush.bf16.msra.mxu0 %v1951_v36  ;;  %981 = vmatmul.bf16.vlgmr.msrb.gmra.mxu1 %v508_v41 }
  0x50   : > { %1871 = vmatmul.msk.bf16.vlgmr.msrb.gmra.mxu2 %vm2288_vm1, %v1870_v43 }
  0x51   : > { %1214 = vmatmul.bf16.vlgmr.msrb.gmra.mxu3 %v998_v44 }
  0x53   : > { %1220 = vmatpush.bf16.msra.mxu0 %v1950_v42 }
  0x57   : > { %1221 = vmatpush.bf16.msra.mxu0 %v1949_v45 }
  0x5b   : > { %1222 = vmatpush.bf16.msra.mxu0 %v1948_v46 }
  0x5f   : > { %1223 = vmatpush.bf16.msra.mxu0 %v1947_v47 }
  0x63   : > { %1224 = vmatpush.bf16.msra.mxu0 %v1946_v48 }
  0x67   : > { %1225 = vmatpush.bf16.msra.mxu0 %v1945_v49 }
  0x6b   : > { %1226 = vmatpush.bf16.msra.mxu0 %v1944_v50 }
  0x6e   : > { %1227 = vmatmul.bf16.vlgmr.msra.gmra.mxu0 %v999_v51 }
  0xab   : > { %v773_v52 = vpop.f32.mrf.mxu0 }
  0xac   : > { %v786_v53 = vpop.f32.mrf.mxu1 }
  0xad   : > { %v787_v3 = vadd.f32 %v786_v53, %v773_v52 }
  0xb3   : > { %v775_v54 = vpop.f32.mrf.mxu0  ;;  %v799_v56 = vpop.f32.mrf.mxu2 }
  0xb4   : > { %v788_v55 = vpop.f32.mrf.mxu1  ;;  %v956_v57 = vpop.f32.mrf.mxu3  ;;  %v800_v6 = vadd.f32 %v799_v56, %v787_v3 }
  0xb6   : > { %v957_v7 = vadd.f32 %v956_v57, %v800_v6 }
  0xbb   : > { %v801_v58 = vpop.f32.mrf.mxu2 }
  0xbc   : > { %v958_v59 = vpop.f32.mrf.mxu3 }
  0xcb   : > { %v969_v60 = vpop.f32.mrf.mxu0 }
  0xcc   : > { %v982_v61 = vpop.f32.mrf.mxu1  ;;  %v970_v8 = vadd.f32 %v969_v60, %v957_v7 }
  0xce   : > { %v983_v11 = vadd.f32 %v982_v61, %v970_v8 }
  0xd3   : > { %v971_v63 = vpop.f32.mrf.mxu0  ;;  %v1202_v0 = vpop.f32.mrf.mxu2 }
  0xd4   : > { %v1215_v1 = vpop.f32.mrf.mxu3  ;;  %v984_v2 = vpop.f32.mrf.mxu1 }
  0xd5   : > { %v1216_v9 = vadd.f32 %v1215_v1, %v1202_v0 }
  0xdb   : > { %v1204_v4 = vpop.f32.mrf.mxu2 }
  0xdc   : > { %v1217_v5 = vpop.f32.mrf.mxu3 }
  0xeb   : > { %v1228_v10 = vpop.f32.mrf.mxu0 }
  0xec   : > { %v1229_v12 = vadd.f32 %v1228_v10, %v1216_v9 }
  0xee   : > { %v1232_v13 = vadd.f32 %v1229_v12, %v983_v11 }
  0xf0   : > { %1233 = vst [vmem:[%s470_s19] sm:$0xff] %v1232_v13  ;;  %v1235_v14 = vrot.slane %v1232_v13, 4  ;;  %v1242_v15 = vmul.f32 %v1232_v13, %v1232_v13 }
  0xf2   : > { %v1236_v16 = vadd.f32 %v1235_v14, %v1232_v13  ;;  %v1243_v17 = vrot.slane %v1242_v15, 4 }
  0xf3   : > { %v1230_v18 = vpop.f32.mrf.mxu0 }
  0xf4   : > { %v1237_v19 = vrot.slane %v1236_v16, 2  ;;  %v1244_v22 = vadd.f32 %v1243_v17, %v1242_v15 }
  0xf6   : > { %v1238_v23 = vadd.f32 %v1237_v19, %v1236_v16  ;;  %v1245_v24 = vrot.slane %v1244_v22, 2 }
  0xf8   : > { %v1239_v25 = vrot.slane %v1238_v23, 1  ;;  %v1246_v26 = vadd.f32 %v1245_v24, %v1244_v22 }
  0xfa   : > { %v1240_v27 = vadd.f32 %v1239_v25, %v1238_v23  ;;  %v1247_v28 = vrot.slane %v1246_v26, 1 }
  0xfc   : > { %1241 = vst [vmem:[%s2421_s12] sm:$0x1] %v1240_v27  ;;  %v1248_v29 = vadd.f32 %v1247_v28, %v1246_v26 }
  0xfe   : > { %1249 = vst [vmem:[%s2421_s12 + $0x1] sm:$0x1] %v1248_v29 }
  0xff PF: > { %s18_s28 = sadd.s32 1, %s2034_s28   ;;  %s2454_s24 = smov %s2026_s26 }
 0x100   : > { %p15_p0 = scmp.ge.s32.totalorder %s18_s28, 18   ;;  %s2455_s25 = smov %s2030_s27 }
 0x101   : > { %s2456_s26 = smov %s2459_s29  ;;  %s2457_s27 = smov %s2463_s30 }
 0x102   :  { %17 = sbr.rel (!%p15_p0) target bundleno = 3 (0x3), region = 97 }

</bundles_post_ra>
